<compile_context>
chip_gen: v6e
topology: v6e:2x2x1
jax: 0.10.0
libtpu: 0.0.40
codegen_flags: <defaults>
</compile_context>

<pallas_src>
import jax
import jax.numpy as jnp
from jax.experimental import pallas as pl
from jax.experimental.pallas import tpu as pltpu


def _round_up(n, m):
    return (n + m - 1) // m * m


# -----------------------------------------------------------------------------
# generic conv kernel: one fused MXU dot per output tile
#   operand  : (K_total, tile) bf16 built from lane-shifted tap windows of the
#              VMEM-resident input frame(s)   (K_total = n_taps * sum(C_in_i))
#   weight   : (C_out, K_total) bf16, pre-packed to match the operand row order
#   epilogue : + bias (f32), optional LeakyReLU(0.1), optional 0/1 mask, cast, store
# -----------------------------------------------------------------------------
def _make_conv_kernel(n_in, offsets, tile, leaky, has_mask):
    max_off = max(offsets)
    win_len = tile + max_off

    def kernel(*refs):
        x_refs = refs[:n_in]
        w_ref = refs[n_in]
        b_ref = refs[n_in + 1]
        mask_ref = refs[n_in + 2] if has_mask else None
        o_ref = refs[-1]

        p0 = pl.multiple_of(pl.program_id(1) * tile, tile)   # 128-aligned tile start
        pieces = []
        for i in range(n_in):
            # one aligned dynamic slice per stream, then static lane-shifted views
            win = x_refs[i][0, :, pl.ds(p0, win_len)]         # (C_in, win_len) bf16
            for off in offsets:
                pieces.append(win[:, off:off + tile])
        xk = pieces[0] if len(pieces) == 1 else jnp.concatenate(pieces, axis=0)

        acc = jnp.dot(w_ref[...], xk, preferred_element_type=jnp.float32)
        acc = acc + b_ref[...]                                # (C_out, 1) broadcast
        if leaky:                                             # fused LeakyReLU(0.1)
            acc = jnp.where(acc >= 0, acc, 0.1 * acc)
        if has_mask:                                          # zero junk cols / tail
            acc = acc * mask_ref[...]
        o_ref[0] = acc.astype(o_ref.dtype)

    return kernel


def _conv_call(xs, w, bias, mask, *, offsets, tile, n_tiles, leaky, out_dtype):
    """xs: list of [B, C_in_i, N_in] bf16 full frames; w: [C_out, K_total] bf16 packed;
       bias: [C_out] f32; mask: [1, n_tiles*tile] f32 or None."""
    B = xs[0].shape[0]
    C_out = w.shape[0]
    has_mask = mask is not None
    kernel = _make_conv_kernel(len(xs), tuple(offsets), tile, leaky, has_mask)

    in_specs = [pl.BlockSpec((1,) + x.shape[1:], lambda b, t: (b, 0, 0)) for x in xs]
    in_specs.append(pl.BlockSpec(w.shape, lambda b, t: (0, 0)))
    in_specs.append(pl.BlockSpec((C_out, 1), lambda b, t: (0, 0)))
    args = list(xs) + [w, bias.astype(jnp.float32).reshape(C_out, 1)]
    if has_mask:
        in_specs.append(pl.BlockSpec((1, tile), lambda b, t: (0, t)))
        args.append(mask)

    return pl.pallas_call(
        kernel,
        out_shape=jax.ShapeDtypeStruct((B, C_out, n_tiles * tile), out_dtype),
        grid=(B, n_tiles),
        in_specs=in_specs,
        out_specs=pl.BlockSpec((1, C_out, tile), lambda b, t: (b, 0, t)),
        compiler_params=pltpu.CompilerParams(
            dimension_semantics=("parallel", "parallel"),
            vmem_limit_bytes=48 * 1024 * 1024),
    )(*args)


# -----------------------------------------------------------------------------
# Up.forward
# -----------------------------------------------------------------------------
def up_forward(params, x1, x2):
    """x1: [B, dims, H, W] f32, x2: [B, dims//2, 2H, 2W] f32 -> [B, dims//2, 2H, 2W] f32."""
    B, dims, H, W = x1.shape
    half = dims // 2
    H2, W2 = 2 * H, 2 * W
    ws = W2 + 2                       # flat row stride of the 1-px padded frame
    shift = ws + 1                    # (+1 row, +1 col) offset into the padded frame
    L = H2 * ws                       # flat conv-output frame length (with junk cols)
    offs = tuple(kh * ws + kw for kh in range(3) for kw in range(3))

    # tiling: lane-dense output tiles (multiples of 128)
    Np = H * W
    tile1 = min(512, _round_up(Np, 128))
    nt1 = pl.cdiv(Np, tile1)
    tile = min(512, _round_up(L, 128))
    nt = pl.cdiv(L, tile)
    in_len = nt * tile + 2 * ws + 2   # padded-flat input length the 3x3 kernels read

    # precomputed junk-column / tail mask shared by the 3x3 convs that need exact zeros
    p = jnp.arange(nt * tile)
    mask = (((p % ws) < W2) & (p < L)).astype(jnp.float32)[None, :]

    # self.up[0:2]: 1x1 conv + LeakyReLU(0.1)  (pixels of x1 on lanes)
    x1f = x1.astype(jnp.bfloat16).reshape(B, dims, Np)
    x1f = jnp.pad(x1f, ((0, 0), (0, 0), (0, nt1 * tile1 - Np)))
    u = _conv_call([x1f], params['up0_w'], params['up0_b'], None,
                   offsets=(0,), tile=tile1, n_tiles=nt1, leaky=True,
                   out_dtype=jnp.bfloat16)

    # self.up[2]: PixelShuffle(2) + 1px zero border + flatten (bf16 layout glue)
    u = u[:, :, :Np].reshape(B, half, 2, 2, H, W)
    u = u.transpose(0, 1, 4, 2, 5, 3).reshape(B, half, H2, W2)
    u = jnp.pad(u, ((0, 0), (0, 0), (1, 1), (1, 1))).reshape(B, half, (H2 + 2) * ws)
    u = jnp.pad(u, ((0, 0), (0, 0), (0, in_len - (H2 + 2) * ws)))

    # self.up[3]: 3x3 conv -> plain bf16 frame (junk cols zeroed by the mask)
    y1 = _conv_call([u], params['up3_w'], params['up3_b'], mask,
                    offsets=offs, tile=tile, n_tiles=nt, leaky=False,
                    out_dtype=jnp.bfloat16)
    y1 = jnp.pad(y1[:, :, :L], ((0, 0), (0, 0), (shift, in_len - shift - L)))

    # x2 in padded-flat bf16 layout
    x2p = jnp.pad(x2.astype(jnp.bfloat16), ((0, 0), (0, 0), (1, 1), (1, 1)))
    x2p = x2p.reshape(B, half, (H2 + 2) * ws)
    x2p = jnp.pad(x2p, ((0, 0), (0, 0), (0, in_len - (H2 + 2) * ws)))

    # self.conv[0:2]: 3x3 conv over cat([x2, up(x1)], 1) + LeakyReLU(0.1);
    # the concat is fused into the contraction dim (K = 9*dims, single dot).
    z = _conv_call([x2p, y1], params['c0_w'], params['c0_b'], mask,
                   offsets=offs, tile=tile, n_tiles=nt, leaky=True,
                   out_dtype=jnp.bfloat16)
    z = jnp.pad(z[:, :, :L], ((0, 0), (0, 0), (shift, in_len - shift - L)))

    # self.conv[2]: final 3x3 conv, f32 output; junk cols dropped by the slice below
    out = _conv_call([z], params['c2_w'], params['c2_b'], None,
                     offsets=offs, tile=tile, n_tiles=nt, leaky=False,
                     out_dtype=jnp.float32)
    return out[:, :, :L].reshape(B, half, H2, ws)[:, :, :, :W2]


# -----------------------------------------------------------------------------
# parameters (PyTorch layout) and conversion to the packed kernel layout
# -----------------------------------------------------------------------------
def init_params(key, dims):
    half = dims // 2
    ks = jax.random.split(key, 8)
    s = 0.1
    return {
        'up0_w': jax.random.normal(ks[0], (2 * dims, dims, 1, 1), jnp.float32) * s,
        'up0_b': jax.random.normal(ks[1], (2 * dims,), jnp.float32) * s,
        'up3_w': jax.random.normal(ks[2], (half, half, 3, 3), jnp.float32) * s,
        'up3_b': jax.random.normal(ks[3], (half,), jnp.float32) * s,
        'c0_w':  jax.random.normal(ks[4], (half, dims, 3, 3), jnp.float32) * s,
        'c0_b':  jax.random.normal(ks[5], (half,), jnp.float32) * s,
        'c2_w':  jax.random.normal(ks[6], (half, half, 3, 3), jnp.float32) * s,
        'c2_b':  jax.random.normal(ks[7], (half,), jnp.float32) * s,
    }


def _pack_w3(w_oihw):
    # (O, I, 3, 3) -> (O, 9*I) with column order (kh, kw, ci) matching the stacked
    # operand rows [tap k major, input channel minor]; bf16 for the MXU.
    O, I, KH, KW = w_oihw.shape
    return jnp.transpose(w_oihw, (0, 2, 3, 1)).reshape(O, KH * KW * I).astype(jnp.bfloat16)


def prepare_params(pt, dims):
    half = dims // 2
    return {
        'up0_w': pt['up0_w'][:, :, 0, 0].astype(jnp.bfloat16),     # (2*dims, dims)
        'up0_b': pt['up0_b'],
        'up3_w': _pack_w3(pt['up3_w']), 'up3_b': pt['up3_b'],
        # concat fused into K: [x2 taps | up(x1) taps]
        'c0_w': jnp.concatenate([_pack_w3(pt['c0_w'][:, :half]),
                                 _pack_w3(pt['c0_w'][:, half:])], axis=1),
        'c0_b': pt['c0_b'],
        'c2_w': _pack_w3(pt['c2_w']), 'c2_b': pt['c2_b'],
    }


# -----------------------------------------------------------------------------
# pure-JAX (XLA) reference of the PyTorch forward for a numerical sanity check.
# Note: kernels use bf16 MXU operands / bf16 intermediates with f32 accumulation,
# so the comparison uses a correspondingly loose tolerance (deliberate trade).
# -----------------------------------------------------------------------------
def _ref_conv2d(x, w, b, pad):
    out = jax.lax.conv_general_dilated(
        x, w, window_strides=(1, 1), padding=[(pad, pad), (pad, pad)],
        dimension_numbers=('NCHW', 'OIHW', 'NCHW'))
    return out + b[None, :, None, None]


def up_reference(pt, x1, x2):
    u = _ref_conv2d(x1, pt['up0_w'], pt['up0_b'], 0)
    u = jnp.where(u >= 0, u, 0.1 * u)
    B, C4, H, W = u.shape
    half = C4 // 4
    u = u.reshape(B, half, 2, 2, H, W).transpose(0, 1, 4, 2, 5, 3).reshape(B, half, 2 * H, 2 * W)
    u = _ref_conv2d(u, pt['up3_w'], pt['up3_b'], 1)
    x = jnp.concatenate([x2, u], axis=1)
    x = _ref_conv2d(x, pt['c0_w'], pt['c0_b'], 1)
    x = jnp.where(x >= 0, x, 0.1 * x)
    return _ref_conv2d(x, pt['c2_w'], pt['c2_b'], 1)


# -----------------------------------------------------------------------------
if __name__ == "__main__":
    B, dims, H, W = 2, 32, 16, 16
    half = dims // 2

    key = jax.random.PRNGKey(0)
    k1, k2, kp = jax.random.split(key, 3)
    x1 = jax.random.normal(k1, (B, dims, H, W), jnp.float32)
    x2 = jax.random.normal(k2, (B, half, 2 * H, 2 * W), jnp.float32)

    pt = init_params(kp, dims)          # PyTorch-layout f32 weights
    pk = prepare_params(pt, dims)       # packed bf16 kernel weights

    fwd = jax.jit(up_forward)
    out = fwd(pk, x1, x2)
    jax.block_until_ready(out)
    assert out.shape == (B, half, 2 * H, 2 * W)

    # numerical check against the XLA reference (bf16 operands, f32 accumulation)
    ref = up_reference(pt, x1, x2)
    err = float(jnp.max(jnp.abs(out - ref)))
    tol = 5e-2 * float(jnp.max(jnp.abs(ref))) + 1e-3
    assert err < tol, (err, tol)

    print("KERNEL_OK")
</pallas_src>

<mosaic_0001>
module attributes {stable_mosaic.version = 11 : i64} {
  func.func @kernel(%arg0: i32, %arg1: i32, %arg2: memref<1x32x256xbf16, #tpu.memory_space<vmem>>, %arg3: memref<64x32xbf16, #tpu.memory_space<vmem>>, %arg4: memref<64x1xf32, #tpu.memory_space<vmem>>, %arg5: memref<1x64x256xbf16, #tpu.memory_space<vmem>>) attributes {dimension_semantics = [#tpu.dimension_semantics<parallel>, #tpu.dimension_semantics<parallel>], iteration_bounds = array<i64: 2, 1>, scalar_prefetch = 0 : i64, scratch_operands = 0 : i64, tpu.core_type = #tpu.core_type<tc>, window_params = [{transform_indices = @transform_0, window_bounds = array<i64: 1, 32, 256>}, {pipeline_mode = #tpu.pipeline_mode<synchronous>, transform_indices = @transform_1, window_bounds = array<i64: 64, 32>}, {pipeline_mode = #tpu.pipeline_mode<synchronous>, transform_indices = @transform_2, window_bounds = array<i64: 64, 1>}, {transform_indices = @transform_3, window_bounds = array<i64: 1, 64, 256>}]} {
    %c256_i32 = arith.constant 256 : i32
    %0 = arith.muli %arg1, %c256_i32 : i32
    %1 = tpu.assume_multiple %0, 256 : i32
    %c0 = arith.constant 0 : index
    %c0_0 = arith.constant 0 : index
    %2 = arith.index_cast %1 : i32 to index
    %3 = vector.load %arg2[%c0, %c0_0, %2] : memref<1x32x256xbf16, #tpu.memory_space<vmem>>, vector<1x32x256xbf16>
    %4 = vector.shape_cast %3 : vector<1x32x256xbf16> to vector<32x256xbf16>
    %c0_1 = arith.constant 0 : index
    %c0_2 = arith.constant 0 : index
    %5 = vector.load %arg3[%c0_1, %c0_2] : memref<64x32xbf16, #tpu.memory_space<vmem>>, vector<64x32xbf16>
    %cst = arith.constant dense<0.000000e+00> : vector<64x256xf32>
    %6 = tpu.matmul %5, %4, %cst {dimension_numbers = #tpu.dot_dimension_numbers<[1], [0], [0], [1], [0, 0, 1, 1], [], []>} : vector<64x32xbf16>, vector<32x256xbf16>, vector<64x256xf32> -> vector<64x256xf32>
    %c0_3 = arith.constant 0 : index
    %c0_4 = arith.constant 0 : index
    %7 = vector.load %arg4[%c0_3, %c0_4] : memref<64x1xf32, #tpu.memory_space<vmem>>, vector<64x1xf32>
    %8 = vector.broadcast %7 : vector<64x1xf32> to vector<64x256xf32>
    %9 = arith.addf %6, %8 : vector<64x256xf32>
    %cst_5 = arith.constant 0.000000e+00 : f32
    %10 = vector.broadcast %cst_5 : f32 to vector<64x256xf32>
    %11 = arith.cmpf oge, %9, %10 : vector<64x256xf32>
    %cst_6 = arith.constant 1.000000e-01 : f32
    %12 = vector.broadcast %cst_6 : f32 to vector<64x256xf32>
    %13 = arith.mulf %12, %9 : vector<64x256xf32>
    %14 = arith.select %11, %9, %13 : vector<64x256xi1>, vector<64x256xf32>
    %15 = arith.truncf %14 : vector<64x256xf32> to vector<64x256xbf16>
    %c0_7 = arith.constant 0 : index
    %c0_8 = arith.constant 0 : index
    %c0_9 = arith.constant 0 : index
    %16 = vector.load %arg5[%c0_7, %c0_8, %c0_9] : memref<1x64x256xbf16, #tpu.memory_space<vmem>>, vector<1x64x256xbf16>
    %17 = vector.shape_cast %16 : vector<1x64x256xbf16> to vector<64x256xbf16>
    %18 = vector.shape_cast %15 : vector<64x256xbf16> to vector<1x64x256xbf16>
    tpu.vector_store %arg5[%c0_7, %c0_8, %c0_9], %18 {strides = array<i32>} : memref<1x64x256xbf16, #tpu.memory_space<vmem>>, vector<1x64x256xbf16>,
    return
  }
  func.func @transform_0(%arg0: i32, %arg1: i32) -> (i32, i32, i32) {
    %c0_i32 = arith.constant 0 : i32
    %c0_i32_0 = arith.constant 0 : i32
    %c0_i32_1 = arith.constant 0 : i32
    return %arg0, %c0_i32, %c0_i32_0 : i32, i32, i32
  }
  func.func @transform_1(%arg0: i32, %arg1: i32) -> (i32, i32) {
    %c0_i32 = arith.constant 0 : i32
    %c0_i32_0 = arith.constant 0 : i32
    %c0_i32_1 = arith.constant 0 : i32
    return %c0_i32, %c0_i32_0 : i32, i32
  }
  func.func @transform_2(%arg0: i32, %arg1: i32) -> (i32, i32) {
    %c0_i32 = arith.constant 0 : i32
    %c0_i32_0 = arith.constant 0 : i32
    %c0_i32_1 = arith.constant 0 : i32
    return %c0_i32, %c0_i32_0 : i32, i32
  }
  func.func @transform_3(%arg0: i32, %arg1: i32) -> (i32, i32, i32) {
    %c0_i32 = arith.constant 0 : i32
    %c0_i32_0 = arith.constant 0 : i32
    return %arg0, %c0_i32, %arg1 : i32, i32, i32
  }
}

module attributes {stable_mosaic.version = 11 : i64} {
  func.func @kernel(%arg0: i32, %arg1: i32, %arg2: memref<1x16x1606xbf16, #tpu.memory_space<vmem>>, %arg3: memref<16x144xbf16, #tpu.memory_space<vmem>>, %arg4: memref<16x1xf32, #tpu.memory_space<vmem>>, %arg5: memref<1x512xf32, #tpu.memory_space<vmem>>, %arg6: memref<1x16x512xbf16, #tpu.memory_space<vmem>>) attributes {dimension_semantics = [#tpu.dimension_semantics<parallel>, #tpu.dimension_semantics<parallel>], iteration_bounds = array<i64: 2, 3>, scalar_prefetch = 0 : i64, scratch_operands = 0 : i64, tpu.core_type = #tpu.core_type<tc>, window_params = [{transform_indices = @transform_0, window_bounds = array<i64: 1, 16, 1606>}, {pipeline_mode = #tpu.pipeline_mode<synchronous>, transform_indices = @transform_1, window_bounds = array<i64: 16, 144>}, {pipeline_mode = #tpu.pipeline_mode<synchronous>, transform_indices = @transform_2, window_bounds = array<i64: 16, 1>}, {transform_indices = @transform_3, window_bounds = array<i64: 1, 512>}, {transform_indices = @transform_4, window_bounds = array<i64: 1, 16, 512>}]} {
    %c512_i32 = arith.constant 512 : i32
    %0 = arith.muli %arg1, %c512_i32 : i32
    %1 = tpu.assume_multiple %0, 512 : i32
    %c0 = arith.constant 0 : index
    %c0_0 = arith.constant 0 : index
    %2 = arith.index_cast %1 : i32 to index
    %3 = vector.load %arg2[%c0, %c0_0, %2] : memref<1x16x1606xbf16, #tpu.memory_space<vmem>>, vector<1x16x582xbf16>
    %4 = vector.shape_cast %3 : vector<1x16x582xbf16> to vector<16x582xbf16>
    %5 = vector.extract_strided_slice %4 {offsets = [0, 0], sizes = [16, 512], strides = [1, 1]} : vector<16x582xbf16> to vector<16x512xbf16>
    %6 = vector.extract_strided_slice %4 {offsets = [0, 1], sizes = [16, 512], strides = [1, 1]} : vector<16x582xbf16> to vector<16x512xbf16>
    %7 = vector.extract_strided_slice %4 {offsets = [0, 2], sizes = [16, 512], strides = [1, 1]} : vector<16x582xbf16> to vector<16x512xbf16>
    %8 = vector.extract_strided_slice %4 {offsets = [0, 34], sizes = [16, 512], strides = [1, 1]} : vector<16x582xbf16> to vector<16x512xbf16>
    %9 = vector.extract_strided_slice %4 {offsets = [0, 35], sizes = [16, 512], strides = [1, 1]} : vector<16x582xbf16> to vector<16x512xbf16>
    %10 = vector.extract_strided_slice %4 {offsets = [0, 36], sizes = [16, 512], strides = [1, 1]} : vector<16x582xbf16> to vector<16x512xbf16>
    %11 = vector.extract_strided_slice %4 {offsets = [0, 68], sizes = [16, 512], strides = [1, 1]} : vector<16x582xbf16> to vector<16x512xbf16>
    %12 = vector.extract_strided_slice %4 {offsets = [0, 69], sizes = [16, 512], strides = [1, 1]} : vector<16x582xbf16> to vector<16x512xbf16>
    %13 = vector.extract_strided_slice %4 {offsets = [0, 70], sizes = [16, 512], strides = [1, 1]} : vector<16x582xbf16> to vector<16x512xbf16>
    %14 = tpu.concatenate %5, %6, %7, %8, %9, %10, %11, %12, %13 in 0 : vector<16x512xbf16>, vector<16x512xbf16>, vector<16x512xbf16>, vector<16x512xbf16>, vector<16x512xbf16>, vector<16x512xbf16>, vector<16x512xbf16>, vector<16x512xbf16>, vector<16x512xbf16> -> vector<144x512xbf16>
    %c0_1 = arith.constant 0 : index
    %c0_2 = arith.constant 0 : index
    %15 = vector.load %arg3[%c0_1, %c0_2] : memref<16x144xbf16, #tpu.memory_space<vmem>>, vector<16x144xbf16>
    %cst = arith.constant dense<0.000000e+00> : vector<16x512xf32>
    %16 = tpu.matmul %15, %14, %cst {dimension_numbers = #tpu.dot_dimension_numbers<[1], [0], [0], [1], [0, 0, 1, 1], [], []>} : vector<16x144xbf16>, vector<144x512xbf16>, vector<16x512xf32> -> vector<16x512xf32>
    %c0_3 = arith.constant 0 : index
    %c0_4 = arith.constant 0 : index
    %17 = vector.load %arg4[%c0_3, %c0_4] : memref<16x1xf32, #tpu.memory_space<vmem>>, vector<16x1xf32>
    %18 = vector.broadcast %17 : vector<16x1xf32> to vector<16x512xf32>
    %19 = arith.addf %16, %18 : vector<16x512xf32>
    %c0_5 = arith.constant 0 : index
    %c0_6 = arith.constant 0 : index
    %20 = vector.load %arg5[%c0_5, %c0_6] : memref<1x512xf32, #tpu.memory_space<vmem>>, vector<1x512xf32>
    %21 = vector.broadcast %20 : vector<1x512xf32> to vector<16x512xf32>
    %22 = arith.mulf %19, %21 : vector<16x512xf32>
    %23 = arith.truncf %22 : vector<16x512xf32> to vector<16x512xbf16>
    %c0_7 = arith.constant 0 : index
    %c0_8 = arith.constant 0 : index
    %c0_9 = arith.constant 0 : index
    %24 = vector.load %arg6[%c0_7, %c0_8, %c0_9] : memref<1x16x512xbf16, #tpu.memory_space<vmem>>, vector<1x16x512xbf16>
    %25 = vector.shape_cast %24 : vector<1x16x512xbf16> to vector<16x512xbf16>
    %26 = vector.shape_cast %23 : vector<16x512xbf16> to vector<1x16x512xbf16>
    tpu.vector_store %arg6[%c0_7, %c0_8, %c0_9], %26 {strides = array<i32>} : memref<1x16x512xbf16, #tpu.memory_space<vmem>>, vector<1x16x512xbf16>,
    return
  }
  func.func @transform_0(%arg0: i32, %arg1: i32) -> (i32, i32, i32) {
    %c0_i32 = arith.constant 0 : i32
    %c0_i32_0 = arith.constant 0 : i32
    %c0_i32_1 = arith.constant 0 : i32
    return %arg0, %c0_i32, %c0_i32_0 : i32, i32, i32
  }
  func.func @transform_1(%arg0: i32, %arg1: i32) -> (i32, i32) {
    %c0_i32 = arith.constant 0 : i32
    %c0_i32_0 = arith.constant 0 : i32
    %c0_i32_1 = arith.constant 0 : i32
    return %c0_i32, %c0_i32_0 : i32, i32
  }
  func.func @transform_2(%arg0: i32, %arg1: i32) -> (i32, i32) {
    %c0_i32 = arith.constant 0 : i32
    %c0_i32_0 = arith.constant 0 : i32
    %c0_i32_1 = arith.constant 0 : i32
    return %c0_i32, %c0_i32_0 : i32, i32
  }
  func.func @transform_3(%arg0: i32, %arg1: i32) -> (i32, i32) {
    %c0_i32 = arith.constant 0 : i32
    %c0_i32_0 = arith.constant 0 : i32
    return %c0_i32, %arg1 : i32, i32
  }
  func.func @transform_4(%arg0: i32, %arg1: i32) -> (i32, i32, i32) {
    %c0_i32 = arith.constant 0 : i32
    %c0_i32_0 = arith.constant 0 : i32
    return %arg0, %c0_i32, %arg1 : i32, i32, i32
  }
}

module attributes {stable_mosaic.version = 11 : i64} {
  func.func @kernel(%arg0: i32, %arg1: i32, %arg2: memref<1x16x1606xbf16, #tpu.memory_space<vmem>>, %arg3: memref<1x16x1606xbf16, #tpu.memory_space<vmem>>, %arg4: memref<16x288xbf16, #tpu.memory_space<vmem>>, %arg5: memref<16x1xf32, #tpu.memory_space<vmem>>, %arg6: memref<1x512xf32, #tpu.memory_space<vmem>>, %arg7: memref<1x16x512xbf16, #tpu.memory_space<vmem>>) attributes {dimension_semantics = [#tpu.dimension_semantics<parallel>, #tpu.dimension_semantics<parallel>], iteration_bounds = array<i64: 2, 3>, scalar_prefetch = 0 : i64, scratch_operands = 0 : i64, tpu.core_type = #tpu.core_type<tc>, window_params = [{transform_indices = @transform_0, window_bounds = array<i64: 1, 16, 1606>}, {transform_indices = @transform_1, window_bounds = array<i64: 1, 16, 1606>}, {pipeline_mode = #tpu.pipeline_mode<synchronous>, transform_indices = @transform_2, window_bounds = array<i64: 16, 288>}, {pipeline_mode = #tpu.pipeline_mode<synchronous>, transform_indices = @transform_3, window_bounds = array<i64: 16, 1>}, {transform_indices = @transform_4, window_bounds = array<i64: 1, 512>}, {transform_indices = @transform_5, window_bounds = array<i64: 1, 16, 512>}]} {
    %c512_i32 = arith.constant 512 : i32
    %0 = arith.muli %arg1, %c512_i32 : i32
    %1 = tpu.assume_multiple %0, 512 : i32
    %c0 = arith.constant 0 : index
    %c0_0 = arith.constant 0 : index
    %2 = arith.index_cast %1 : i32 to index
    %3 = vector.load %arg2[%c0, %c0_0, %2] : memref<1x16x1606xbf16, #tpu.memory_space<vmem>>, vector<1x16x582xbf16>
    %4 = vector.shape_cast %3 : vector<1x16x582xbf16> to vector<16x582xbf16>
    %5 = vector.extract_strided_slice %4 {offsets = [0, 0], sizes = [16, 512], strides = [1, 1]} : vector<16x582xbf16> to vector<16x512xbf16>
    %6 = vector.extract_strided_slice %4 {offsets = [0, 1], sizes = [16, 512], strides = [1, 1]} : vector<16x582xbf16> to vector<16x512xbf16>
    %7 = vector.extract_strided_slice %4 {offsets = [0, 2], sizes = [16, 512], strides = [1, 1]} : vector<16x582xbf16> to vector<16x512xbf16>
    %8 = vector.extract_strided_slice %4 {offsets = [0, 34], sizes = [16, 512], strides = [1, 1]} : vector<16x582xbf16> to vector<16x512xbf16>
    %9 = vector.extract_strided_slice %4 {offsets = [0, 35], sizes = [16, 512], strides = [1, 1]} : vector<16x582xbf16> to vector<16x512xbf16>
    %10 = vector.extract_strided_slice %4 {offsets = [0, 36], sizes = [16, 512], strides = [1, 1]} : vector<16x582xbf16> to vector<16x512xbf16>
    %11 = vector.extract_strided_slice %4 {offsets = [0, 68], sizes = [16, 512], strides = [1, 1]} : vector<16x582xbf16> to vector<16x512xbf16>
    %12 = vector.extract_strided_slice %4 {offsets = [0, 69], sizes = [16, 512], strides = [1, 1]} : vector<16x582xbf16> to vector<16x512xbf16>
    %13 = vector.extract_strided_slice %4 {offsets = [0, 70], sizes = [16, 512], strides = [1, 1]} : vector<16x582xbf16> to vector<16x512xbf16>
    %c0_1 = arith.constant 0 : index
    %c0_2 = arith.constant 0 : index
    %14 = arith.index_cast %1 : i32 to index
    %15 = vector.load %arg3[%c0_1, %c0_2, %14] : memref<1x16x1606xbf16, #tpu.memory_space<vmem>>, vector<1x16x582xbf16>
    %16 = vector.shape_cast %15 : vector<1x16x582xbf16> to vector<16x582xbf16>
    %17 = vector.extract_strided_slice %16 {offsets = [0, 0], sizes = [16, 512], strides = [1, 1]} : vector<16x582xbf16> to vector<16x512xbf16>
    %18 = vector.extract_strided_slice %16 {offsets = [0, 1], sizes = [16, 512], strides = [1, 1]} : vector<16x582xbf16> to vector<16x512xbf16>
    %19 = vector.extract_strided_slice %16 {offsets = [0, 2], sizes = [16, 512], strides = [1, 1]} : vector<16x582xbf16> to vector<16x512xbf16>
    %20 = vector.extract_strided_slice %16 {offsets = [0, 34], sizes = [16, 512], strides = [1, 1]} : vector<16x582xbf16> to vector<16x512xbf16>
    %21 = vector.extract_strided_slice %16 {offsets = [0, 35], sizes = [16, 512], strides = [1, 1]} : vector<16x582xbf16> to vector<16x512xbf16>
    %22 = vector.extract_strided_slice %16 {offsets = [0, 36], sizes = [16, 512], strides = [1, 1]} : vector<16x582xbf16> to vector<16x512xbf16>
    %23 = vector.extract_strided_slice %16 {offsets = [0, 68], sizes = [16, 512], strides = [1, 1]} : vector<16x582xbf16> to vector<16x512xbf16>
    %24 = vector.extract_strided_slice %16 {offsets = [0, 69], sizes = [16, 512], strides = [1, 1]} : vector<16x582xbf16> to vector<16x512xbf16>
    %25 = vector.extract_strided_slice %16 {offsets = [0, 70], sizes = [16, 512], strides = [1, 1]} : vector<16x582xbf16> to vector<16x512xbf16>
    %26 = tpu.concatenate %5, %6, %7, %8, %9, %10, %11, %12, %13, %17, %18, %19, %20, %21, %22, %23 in 0 : vector<16x512xbf16>, vector<16x512xbf16>, vector<16x512xbf16>, vector<16x512xbf16>, vector<16x512xbf16>, vector<16x512xbf16>, vector<16x512xbf16>, vector<16x512xbf16>, vector<16x512xbf16>, vector<16x512xbf16>, vector<16x512xbf16>, vector<16x512xbf16>, vector<16x512xbf16>, vector<16x512xbf16>, vector<16x512xbf16>, vector<16x512xbf16> -> vector<256x512xbf16>
    %27 = tpu.concatenate %24, %25 in 0 : vector<16x512xbf16>, vector<16x512xbf16> -> vector<32x512xbf16>
    %28 = tpu.concatenate %26, %27 in 0 : vector<256x512xbf16>, vector<32x512xbf16> -> vector<288x512xbf16>
    %c0_3 = arith.constant 0 : index
    %c0_4 = arith.constant 0 : index
    %29 = vector.load %arg4[%c0_3, %c0_4] : memref<16x288xbf16, #tpu.memory_space<vmem>>, vector<16x288xbf16>
    %cst = arith.constant dense<0.000000e+00> : vector<16x512xf32>
    %30 = tpu.matmul %29, %28, %cst {dimension_numbers = #tpu.dot_dimension_numbers<[1], [0], [0], [1], [0, 0, 1, 1], [], []>} : vector<16x288xbf16>, vector<288x512xbf16>, vector<16x512xf32> -> vector<16x512xf32>
    %c0_5 = arith.constant 0 : index
    %c0_6 = arith.constant 0 : index
    %31 = vector.load %arg5[%c0_5, %c0_6] : memref<16x1xf32, #tpu.memory_space<vmem>>, vector<16x1xf32>
    %32 = vector.broadcast %31 : vector<16x1xf32> to vector<16x512xf32>
    %33 = arith.addf %30, %32 : vector<16x512xf32>
    %cst_7 = arith.constant 0.000000e+00 : f32
    %34 = vector.broadcast %cst_7 : f32 to vector<16x512xf32>
    %35 = arith.cmpf oge, %33, %34 : vector<16x512xf32>
    %cst_8 = arith.constant 1.000000e-01 : f32
    %36 = vector.broadcast %cst_8 : f32 to vector<16x512xf32>
    %37 = arith.mulf %36, %33 : vector<16x512xf32>
    %38 = arith.select %35, %33, %37 : vector<16x512xi1>, vector<16x512xf32>
    %c0_9 = arith.constant 0 : index
    %c0_10 = arith.constant 0 : index
    %39 = vector.load %arg6[%c0_9, %c0_10] : memref<1x512xf32, #tpu.memory_space<vmem>>, vector<1x512xf32>
    %40 = vector.broadcast %39 : vector<1x512xf32> to vector<16x512xf32>
    %41 = arith.mulf %38, %40 : vector<16x512xf32>
    %42 = arith.truncf %41 : vector<16x512xf32> to vector<16x512xbf16>
    %c0_11 = arith.constant 0 : index
    %c0_12 = arith.constant 0 : index
    %c0_13 = arith.constant 0 : index
    %43 = vector.load %arg7[%c0_11, %c0_12, %c0_13] : memref<1x16x512xbf16, #tpu.memory_space<vmem>>, vector<1x16x512xbf16>
    %44 = vector.shape_cast %43 : vector<1x16x512xbf16> to vector<16x512xbf16>
    %45 = vector.shape_cast %42 : vector<16x512xbf16> to vector<1x16x512xbf16>
    tpu.vector_store %arg7[%c0_11, %c0_12, %c0_13], %45 {strides = array<i32>} : memref<1x16x512xbf16, #tpu.memory_space<vmem>>, vector<1x16x512xbf16>,
    return
  }
  func.func @transform_0(%arg0: i32, %arg1: i32) -> (i32, i32, i32) {
    %c0_i32 = arith.constant 0 : i32
    %c0_i32_0 = arith.constant 0 : i32
    %c0_i32_1 = arith.constant 0 : i32
    return %arg0, %c0_i32, %c0_i32_0 : i32, i32, i32
  }
  func.func @transform_1(%arg0: i32, %arg1: i32) -> (i32, i32, i32) {
    %c0_i32 = arith.constant 0 : i32
    %c0_i32_0 = arith.constant 0 : i32
    %c0_i32_1 = arith.constant 0 : i32
    return %arg0, %c0_i32, %c0_i32_0 : i32, i32, i32
  }
  func.func @transform_2(%arg0: i32, %arg1: i32) -> (i32, i32) {
    %c0_i32 = arith.constant 0 : i32
    %c0_i32_0 = arith.constant 0 : i32
    %c0_i32_1 = arith.constant 0 : i32
    return %c0_i32, %c0_i32_0 : i32, i32
  }
  func.func @transform_3(%arg0: i32, %arg1: i32) -> (i32, i32) {
    %c0_i32 = arith.constant 0 : i32
    %c0_i32_0 = arith.constant 0 : i32
    %c0_i32_1 = arith.constant 0 : i32
    return %c0_i32, %c0_i32_0 : i32, i32
  }
  func.func @transform_4(%arg0: i32, %arg1: i32) -> (i32, i32) {
    %c0_i32 = arith.constant 0 : i32
    %c0_i32_0 = arith.constant 0 : i32
    return %c0_i32, %arg1 : i32, i32
  }
  func.func @transform_5(%arg0: i32, %arg1: i32) -> (i32, i32, i32) {
    %c0_i32 = arith.constant 0 : i32
    %c0_i32_0 = arith.constant 0 : i32
    return %arg0, %c0_i32, %arg1 : i32, i32, i32
  }
}

module attributes {stable_mosaic.version = 11 : i64} {
  func.func @kernel(%arg0: i32, %arg1: i32, %arg2: memref<1x16x1606xbf16, #tpu.memory_space<vmem>>, %arg3: memref<16x144xbf16, #tpu.memory_space<vmem>>, %arg4: memref<16x1xf32, #tpu.memory_space<vmem>>, %arg5: memref<1x16x512xf32, #tpu.memory_space<vmem>>) attributes {dimension_semantics = [#tpu.dimension_semantics<parallel>, #tpu.dimension_semantics<parallel>], iteration_bounds = array<i64: 2, 3>, scalar_prefetch = 0 : i64, scratch_operands = 0 : i64, tpu.core_type = #tpu.core_type<tc>, window_params = [{transform_indices = @transform_0, window_bounds = array<i64: 1, 16, 1606>}, {pipeline_mode = #tpu.pipeline_mode<synchronous>, transform_indices = @transform_1, window_bounds = array<i64: 16, 144>}, {pipeline_mode = #tpu.pipeline_mode<synchronous>, transform_indices = @transform_2, window_bounds = array<i64: 16, 1>}, {transform_indices = @transform_3, window_bounds = array<i64: 1, 16, 512>}]} {
    %c512_i32 = arith.constant 512 : i32
    %0 = arith.muli %arg1, %c512_i32 : i32
    %1 = tpu.assume_multiple %0, 512 : i32
    %c0 = arith.constant 0 : index
    %c0_0 = arith.constant 0 : index
    %2 = arith.index_cast %1 : i32 to index
    %3 = vector.load %arg2[%c0, %c0_0, %2] : memref<1x16x1606xbf16, #tpu.memory_space<vmem>>, vector<1x16x582xbf16>
    %4 = vector.shape_cast %3 : vector<1x16x582xbf16> to vector<16x582xbf16>
    %5 = vector.extract_strided_slice %4 {offsets = [0, 0], sizes = [16, 512], strides = [1, 1]} : vector<16x582xbf16> to vector<16x512xbf16>
    %6 = vector.extract_strided_slice %4 {offsets = [0, 1], sizes = [16, 512], strides = [1, 1]} : vector<16x582xbf16> to vector<16x512xbf16>
    %7 = vector.extract_strided_slice %4 {offsets = [0, 2], sizes = [16, 512], strides = [1, 1]} : vector<16x582xbf16> to vector<16x512xbf16>
    %8 = vector.extract_strided_slice %4 {offsets = [0, 34], sizes = [16, 512], strides = [1, 1]} : vector<16x582xbf16> to vector<16x512xbf16>
    %9 = vector.extract_strided_slice %4 {offsets = [0, 35], sizes = [16, 512], strides = [1, 1]} : vector<16x582xbf16> to vector<16x512xbf16>
    %10 = vector.extract_strided_slice %4 {offsets = [0, 36], sizes = [16, 512], strides = [1, 1]} : vector<16x582xbf16> to vector<16x512xbf16>
    %11 = vector.extract_strided_slice %4 {offsets = [0, 68], sizes = [16, 512], strides = [1, 1]} : vector<16x582xbf16> to vector<16x512xbf16>
    %12 = vector.extract_strided_slice %4 {offsets = [0, 69], sizes = [16, 512], strides = [1, 1]} : vector<16x582xbf16> to vector<16x512xbf16>
    %13 = vector.extract_strided_slice %4 {offsets = [0, 70], sizes = [16, 512], strides = [1, 1]} : vector<16x582xbf16> to vector<16x512xbf16>
    %14 = tpu.concatenate %5, %6, %7, %8, %9, %10, %11, %12, %13 in 0 : vector<16x512xbf16>, vector<16x512xbf16>, vector<16x512xbf16>, vector<16x512xbf16>, vector<16x512xbf16>, vector<16x512xbf16>, vector<16x512xbf16>, vector<16x512xbf16>, vector<16x512xbf16> -> vector<144x512xbf16>
    %c0_1 = arith.constant 0 : index
    %c0_2 = arith.constant 0 : index
    %15 = vector.load %arg3[%c0_1, %c0_2] : memref<16x144xbf16, #tpu.memory_space<vmem>>, vector<16x144xbf16>
    %cst = arith.constant dense<0.000000e+00> : vector<16x512xf32>
    %16 = tpu.matmul %15, %14, %cst {dimension_numbers = #tpu.dot_dimension_numbers<[1], [0], [0], [1], [0, 0, 1, 1], [], []>} : vector<16x144xbf16>, vector<144x512xbf16>, vector<16x512xf32> -> vector<16x512xf32>
    %c0_3 = arith.constant 0 : index
    %c0_4 = arith.constant 0 : index
    %17 = vector.load %arg4[%c0_3, %c0_4] : memref<16x1xf32, #tpu.memory_space<vmem>>, vector<16x1xf32>
    %18 = vector.broadcast %17 : vector<16x1xf32> to vector<16x512xf32>
    %19 = arith.addf %16, %18 : vector<16x512xf32>
    %c0_5 = arith.constant 0 : index
    %c0_6 = arith.constant 0 : index
    %c0_7 = arith.constant 0 : index
    %20 = vector.load %arg5[%c0_5, %c0_6, %c0_7] : memref<1x16x512xf32, #tpu.memory_space<vmem>>, vector<1x16x512xf32>
    %21 = vector.shape_cast %20 : vector<1x16x512xf32> to vector<16x512xf32>
    %22 = vector.shape_cast %19 : vector<16x512xf32> to vector<1x16x512xf32>
    tpu.vector_store %arg5[%c0_5, %c0_6, %c0_7], %22 {strides = array<i32>} : memref<1x16x512xf32, #tpu.memory_space<vmem>>, vector<1x16x512xf32>,
    return
  }
  func.func @transform_0(%arg0: i32, %arg1: i32) -> (i32, i32, i32) {
    %c0_i32 = arith.constant 0 : i32
    %c0_i32_0 = arith.constant 0 : i32
    %c0_i32_1 = arith.constant 0 : i32
    return %arg0, %c0_i32, %c0_i32_0 : i32, i32, i32
  }
  func.func @transform_1(%arg0: i32, %arg1: i32) -> (i32, i32) {
    %c0_i32 = arith.constant 0 : i32
    %c0_i32_0 = arith.constant 0 : i32
    %c0_i32_1 = arith.constant 0 : i32
    return %c0_i32, %c0_i32_0 : i32, i32
  }
  func.func @transform_2(%arg0: i32, %arg1: i32) -> (i32, i32) {
    %c0_i32 = arith.constant 0 : i32
    %c0_i32_0 = arith.constant 0 : i32
    %c0_i32_1 = arith.constant 0 : i32
    return %c0_i32, %c0_i32_0 : i32, i32
  }
  func.func @transform_3(%arg0: i32, %arg1: i32) -> (i32, i32, i32) {
    %c0_i32 = arith.constant 0 : i32
    %c0_i32_0 = arith.constant 0 : i32
    return %arg0, %c0_i32, %arg1 : i32, i32, i32
  }
}

</mosaic_0001>

<bundles_post_ra>
// kernel: up_forward.4
= control target key start
LH: loop header
LB: loop body
LE: loop exit
PB: predicated region body
PF: predicated region fallthrough
CT: control target
= control target key end

     0   :  { %s700_s12 = smov 0   ;;  %s702_s13 = smov 0   ;;  %s788_s0 = inlined_call_operand.vmem [shape: bf16[2,32,256], index: 0, kind: input, shape index: {}]   ;;  %s789_s1 = inlined_call_operand.vmem [shape: bf16[64,32], index: 1, kind: input, shape index: {}]   ;;  %s790_s2 = inlined_call_operand.vmem [shape: f32[64,1], index: 2, kind: input, shape index: {}]   ;;  %s791_s3 = inlined_call_operand.vmem [shape: bf16[2,64,256], index: 3, kind: output, shape index: {}]  }
   0x1   :  { %s704_s14 = smov 0  }
   0x2 LB: > { %s25_s15 = sadd.s32 1, %s673_s13  ;;  %p577_p0 = scmp.ge.s32.totalorder %s677_s14, 1  ;;  %s677_s14 = sphi %s704_s14, %s13_s14   ;;  %s673_s13 = sphi %s702_s13, %s793_s13   ;;  %s669_s12 = sphi %s700_s12, %s792_s12  }
   0x3   : > { %p27_p1 = scmp.ge.s32.totalorder %s25_s15, 2  ;;  %p151_p2 = scmp.lt.s32.totalorder %s677_s14, 3 }
   0x5   : > { %s795_s15 = smov (%p27_p1, %s25_s15), 0  ;;  %p152_p3 = pnand %p577_p0, %p151_p2 }
   0x6   : > { %p179_p4 = scmp.lt.s32.totalorder (!%p152_p3), %s669_s12, 1 }
   0x7   : > { %155 = sbr.rel (%p152_p3) target bundleno = 241 (0xf1), region = 32 }
   0xc   : > { %v679_v0 = vmov 0   ;;  %s797_s12 = smov (!%p179_p4, %s669_s12), 1  ;;  %v214_v1 = vld [vmem:[%s790_s2 + $0x10] sm:$0xff]  ;;  %v212_v2 = vld [vmem:[%s790_s2] sm:$0xff]  ;;  %v215_v6 = vld [vmem:[%s790_s2 + $0x18] sm:$0xff]  ;;  %vm300_vm0 = vcmask 261120  }
   0xd   : > { %345 = vmatprep.mubr.bf16.mxu0 %v679_v0  ;;  %365 = vmatprep.mubr.bf16.mxu1 %v679_v0  ;;  %s604_s16 = sshll.u32 %s797_s12, 5  ;;  %v213_v7 = vld [vmem:[%s790_s2 + $0x8] sm:$0xff]  ;;  %v651_v9 = vld [vmem:[%s789_s1] sm:$0xff]   ;;  %v652_v10 = vld [vmem:[%s789_s1 + $0x10] sm:$0xff]   ;;  %s605_s21 = sshll.u32 %s797_s12, 6 }
   0xe   : > { %644 = vset.pattern.permute.xlu1 %v679_v0  ;;  %643 = vset.pattern.permute.xlu0 %v679_v0  ;;  %s183_s23 = scalar_lea.vmem %s788_s0, %s604_s16  ;;  %v217_v11 = vld [vmem:[%s790_s2 + $0x28] sm:$0xff]  ;;  %v216_v12 = vld [vmem:[%s790_s2 + $0x20] sm:$0xff]  ;;  %v219_v13 = vld [vmem:[%s790_s2 + $0x38] sm:$0xff]  ;;  %s766_s24 = scalar_lea.vmem %s791_s3, %s605_s21 }
   0xf   : > { %232 = vperm.xlu1 %644, %v214_v1   ;;  %222 = vperm.xlu0 %643, %v212_v2   ;;  %v645_v3 = vld [vmem:[%s183_s23 + $0x14] ss:$8 sps:$4 sm:$0xff]   ;;  %v647_v4 = vld [vmem:[%s183_s23 + $0x10] ss:$8 sps:$4 sm:$0xff]   ;;  %v648_v5 = vld [vmem:[%s183_s23 + $0x4] ss:$8 sps:$4 sm:$0xff]  }
  0x10   : > { %325 = vmatprep.subr.bf16.mxu0 %v645_v3  ;;  %614 = vmatprep.subr.bf16.mxu1 %v645_v3  ;;  %v650_v8 = vld [vmem:[%s183_s23] ss:$8 sps:$4 sm:$0xff]   ;;  %v218_v14 = vld [vmem:[%s790_s2 + $0x30] sm:$0xff]  ;;  %v654_v16 = vld [vmem:[%s789_s1 + $0x18] sm:$0xff]  }
  0x11   : > { %326 = vmatpush1.bf16.msra.mxu0 %v647_v4  ;;  %616 = vmatpush1.bf16.msra.mxu1 %v647_v4  ;;  %v653_v15 = vld [vmem:[%s789_s1 + $0x8] sm:$0xff]  }
  0x12   : > { %327 = vmatprep.subr.bf16.mxu0 %v648_v5  ;;  %615 = vmatprep.subr.bf16.mxu1 %v648_v5 }
  0x13   : > { %237 = vperm.xlu1 %644, %v215_v6   ;;  %227 = vperm.xlu0 %643, %v213_v7  }
  0x15   : > { %328 = vmatpush1.bf16.msra.mxu0 %v650_v8  ;;  %617 = vmatpush1.bf16.msra.mxu1 %v650_v8 }
  0x17   : > { %247 = vperm.xlu1 %644, %v217_v11   ;;  %242 = vperm.xlu0 %643, %v216_v12  }
  0x18   : > { %590 = vmatmul.mubr.msk.bf16.vlgmr.msra.gmra.mxu0 %vm300_vm0, %v651_v9  ;;  %592 = vmatmul.mubr.msk.bf16.vlgmr.msra.gmra.mxu1 %vm300_vm0, %v652_v10 }
  0x19   : > { %355 = vmatprep.mubr.bf16.mxu0 %v679_v0  ;;  %375 = vmatprep.mubr.bf16.mxu1 %v679_v0 }
  0x1b   : > { %257 = vperm.xlu1 %644, %v219_v13   ;;  %252 = vperm.xlu0 %643, %v218_v14  }
  0x20   : > { %591 = vmatmul.mubr.msk.bf16.gmra.mxu0 %vm300_vm0, %v653_v15  ;;  %593 = vmatmul.mubr.msk.bf16.gmra.mxu1 %vm300_vm0, %v654_v16 }
  0x8a   : > { %v223_v17 = vpop.permute.xlu0 %222  ;;  %v233_v18 = vpop.permute.xlu1 %232 }
  0x8e   : > { %v228_v19 = vpop.permute.xlu0 %227  ;;  %v760_v20 = vpop.permute.xlu1 %237 }
  0x92   : > { %v243_v21 = vpop.permute.xlu0 %242  ;;  %v248_v28 = vpop.permute.xlu1 %247 }
  0x96   : > { %v253_v51 = vpop.permute.xlu0 %252  ;;  %v258_v10 = vpop.permute.xlu1 %257 }
  0xd8   : > { %v347_v22 = vpop.f32.mrf.mxu0  ;;  %v367_v23 = vpop.f32.mrf.mxu1 }
  0xd9   : > { %v348_v24 = vadd.f32 %v347_v22, %v223_v17  ;;  %v368_v25 = vadd.f32 %v367_v23, %v243_v21 }
  0xda   : > { %v349_v26 = vpop.f32.mrf.mxu0  ;;  %v369_v27 = vpop.f32.mrf.mxu1 }
  0xdb   : > { %v402_v29 = vmul.f32 0.1, %v348_v24  ;;  %v410_v30 = vmul.f32 0.1, %v368_v25  ;;  %vm386_vm1 = vcmp.ge.f32.partialorder %v348_v24, 0.0  ;;  %vm394_vm2 = vcmp.ge.f32.partialorder %v368_v25, 0.0 }
  0xdc   : > { %v350_v31 = vadd.f32 %v349_v26, %v223_v17  ;;  %v370_v32 = vadd.f32 %v369_v27, %v243_v21  ;;  %v351_v33 = vpop.f32.mrf.mxu0  ;;  %v371_v34 = vpop.f32.mrf.mxu1 }
  0xdd   : > { %v352_v35 = vadd.f32 %v351_v33, %v228_v19  ;;  %v372_v36 = vadd.f32 %v371_v34, %v248_v28  ;;  %v418_v41 = vsel %vm386_vm1, %v348_v24, %v402_v29  ;;  %v426_v42 = vsel %vm394_vm2, %v368_v25, %v410_v30 }
  0xde   : > { %vm387_vm3 = vcmp.ge.f32.partialorder %v350_v31, 0.0  ;;  %v403_v37 = vmul.f32 0.1, %v350_v31  ;;  %vm395_vm4 = vcmp.ge.f32.partialorder %v370_v32, 0.0  ;;  %v411_v38 = vmul.f32 0.1, %v370_v32  ;;  %v353_v39 = vpop.f32.mrf.mxu0  ;;  %v373_v40 = vpop.f32.mrf.mxu1 }
  0xdf   : > { %v404_v43 = vmul.f32 0.1, %v352_v35  ;;  %v412_v44 = vmul.f32 0.1, %v372_v36  ;;  %v354_v47 = vadd.f32 %v353_v39, %v228_v19  ;;  %v374_v48 = vadd.f32 %v373_v40, %v248_v28 }
  0xe0   : > { %v419_v45 = vsel %vm387_vm3, %v350_v31, %v403_v37  ;;  %v427_v46 = vsel %vm395_vm4, %v370_v32, %v411_v38  ;;  %v357_v49 = vpop.f32.mrf.mxu0  ;;  %v377_v50 = vpop.f32.mrf.mxu1  ;;  %vm388_vm5 = vcmp.ge.f32.partialorder %v352_v35, 0.0  ;;  %vm396_vm6 = vcmp.ge.f32.partialorder %v372_v36, 0.0 }
  0xe1   : > { %v606_v52 = vpack.c.bf16 %v419_v45, %v418_v41  ;;  %v610_v53 = vpack.c.bf16 %v427_v46, %v426_v42  ;;  %vm389_vm7 = vcmp.ge.f32.partialorder %v354_v47, 0.0  ;;  %v405_v54 = vmul.f32 0.1, %v354_v47 }
  0xe2   : > { %vm397_vm8 = vcmp.ge.f32.partialorder %v374_v48, 0.0  ;;  %v413_v55 = vmul.f32 0.1, %v374_v48  ;;  %v359_v56 = vpop.f32.mrf.mxu0  ;;  %v379_v57 = vpop.f32.mrf.mxu1  ;;  %v358_v58 = vadd.f32 %v357_v49, %v233_v18  ;;  %v378_v59 = vadd.f32 %v377_v50, %v253_v51 }
  0xe3   : > { %482 = vst [vmem:[%s766_s24] sm:$0xff] %v606_v52  ;;  %486 = vst [vmem:[%s766_s24 + $0x20] sm:$0xff] %v610_v53  ;;  %v360_v60 = vadd.f32 %v359_v56, %v233_v18  ;;  %v380_v61 = vadd.f32 %v379_v57, %v253_v51  ;;  %v420_v62 = vsel %vm388_vm5, %v352_v35, %v404_v43 }
  0xe4   : > { %v428_v63 = vsel %vm396_vm6, %v372_v36, %v412_v44  ;;  %v421_v0 = vsel %vm389_vm7, %v354_v47, %v405_v54  ;;  %v429_v1 = vsel %vm397_vm8, %v374_v48, %v413_v55  ;;  %v361_v2 = vpop.f32.mrf.mxu0  ;;  %v381_v3 = vpop.f32.mrf.mxu1  ;;  %vm390_vm9 = vcmp.ge.f32.partialorder %v358_v58, 0.0 }
  0xe5   : > { %v607_v4 = vpack.c.bf16 %v421_v0, %v420_v62  ;;  %v611_v5 = vpack.c.bf16 %v429_v1, %v428_v63  ;;  %v406_v6 = vmul.f32 0.1, %v358_v58  ;;  %vm398_vm10 = vcmp.ge.f32.partialorder %v378_v59, 0.0 }
  0xe6   : > { %v414_v7 = vmul.f32 0.1, %v378_v59  ;;  %vm391_vm11 = vcmp.ge.f32.partialorder %v360_v60, 0.0  ;;  %v407_v8 = vmul.f32 0.1, %v360_v60  ;;  %v363_v9 = vpop.f32.mrf.mxu0  ;;  %vm399_vm12 = vcmp.ge.f32.partialorder %v380_v61, 0.0  ;;  %v383_v17 = vpop.f32.mrf.mxu1 }
  0xe7   : > { %483 = vst [vmem:[%s766_s24 + $0x8] sm:$0xff] %v607_v4  ;;  %487 = vst [vmem:[%s766_s24 + $0x28] sm:$0xff] %v611_v5  ;;  %v415_v11 = vmul.f32 0.1, %v380_v61  ;;  %v362_v12 = vadd.f32 %v361_v2, %v760_v20  ;;  %v422_v13 = vsel %vm390_vm9, %v358_v58, %v406_v6  ;;  %v382_v15 = vadd.f32 %v381_v3, %v258_v10 }
  0xe8   : > { %v423_v14 = vsel %vm391_vm11, %v360_v60, %v407_v8  ;;  %v364_v16 = vadd.f32 %v363_v9, %v760_v20  ;;  %v430_v18 = vsel %vm398_vm10, %v378_v59, %v414_v7  ;;  %v384_v26 = vadd.f32 %v383_v17, %v258_v10 }
  0xe9   : > { %v608_v19 = vpack.c.bf16 %v423_v14, %v422_v13  ;;  %v431_v21 = vsel %vm399_vm12, %v380_v61, %v415_v11  ;;  %v408_v22 = vmul.f32 0.1, %v362_v12  ;;  %vm392_vm13 = vcmp.ge.f32.partialorder %v362_v12, 0.0 }
  0xea   : > { %v612_v23 = vpack.c.bf16 %v431_v21, %v430_v18  ;;  %vm393_vm14 = vcmp.ge.f32.partialorder %v364_v16, 0.0  ;;  %v416_v24 = vmul.f32 0.1, %v382_v15  ;;  %v409_v25 = vmul.f32 0.1, %v364_v16 }
  0xeb   : > { %484 = vst [vmem:[%s766_s24 + $0x10] sm:$0xff] %v608_v19  ;;  %vm400_vm15 = vcmp.ge.f32.partialorder %v382_v15, 0.0  ;;  %v424_v27 = vsel %vm392_vm13, %v362_v12, %v408_v22  ;;  %vm401_vm0 = vcmp.ge.f32.partialorder %v384_v26, 0.0  ;;  %v417_v20 = vmul.f32 0.1, %v384_v26 }
  0xec   : > { %488 = vst [vmem:[%s766_s24 + $0x30] sm:$0xff] %v612_v23  ;;  %v425_v28 = vsel %vm393_vm14, %v364_v16, %v409_v25  ;;  %v432_v30 = vsel %vm400_vm15, %v382_v15, %v416_v24 }
  0xed   : > { %v609_v29 = vpack.c.bf16 %v425_v28, %v424_v27  ;;  %v433_v31 = vsel %vm401_vm0, %v384_v26, %v417_v20 }
  0xee   : > { %v613_v32 = vpack.c.bf16 %v433_v31, %v432_v30 }
  0xef   : > { %485 = vst [vmem:[%s766_s24 + $0x18] sm:$0xff] %v609_v29 }
  0xf0   : > { %489 = vst [vmem:[%s766_s24 + $0x38] sm:$0xff] %v613_v32 }
  0xf1 PF: > { %s13_s14 = sadd.s32 1, %s677_s14   ;;  %s792_s12 = smov %s673_s13 }
  0xf2   : > { %p10_p5 = scmp.ge.s32.totalorder %s13_s14, 4   ;;  %s793_s13 = smov %s795_s15 }
  0xf4   :  { %12 = sbr.rel (!%p10_p5) target bundleno = 2 (0x2), region = 63 }

// kernel: up_forward.5
= control target key start
LH: loop header
LB: loop body
LE: loop exit
PB: predicated region body
PF: predicated region fallthrough
CT: control target
= control target key end

     0   :  { %s898_s15 = smov 0   ;;  %s900_s16 = smov 0   ;;  %s1056_s0 = inlined_call_operand.vmem [shape: bf16[2,16,1606], index: 0, kind: input, shape index: {}]   ;;  %s1057_s1 = inlined_call_operand.vmem [shape: bf16[16,144], index: 1, kind: input, shape index: {}]   ;;  %s1058_s2 = inlined_call_operand.vmem [shape: f32[16,1], index: 2, kind: input, shape index: {}]   ;;  %s1059_s3 = inlined_call_operand.vmem [shape: f32[1,1536], index: 3, kind: input, shape index: {}]   ;;  %s1060_s4 = inlined_call_operand.vmem [shape: bf16[2,16,1536], index: 4, kind: output, shape index: {}]  }
   0x1   :  { %s902_s17 = smov 0   ;;  %s904_s18 = smov 0  }
   0x2   :  { %s906_s19 = smov 0   ;;  %s908_s20 = smov 0  }
   0x3   :  { %s910_s21 = smov 0  }
   0x4 LB: > { %s23_s22 = sadd.s32 1, %s854_s19  ;;  %s26_s23 = sadd.s32 1, %s858_s20  ;;  %s862_s21 = sphi %s910_s21, %s14_s21   ;;  %s858_s20 = sphi %s908_s20, %s1067_s20   ;;  %s854_s19 = sphi %s906_s19, %s1066_s19   ;;  %s850_s18 = sphi %s904_s18, %s1065_s18   ;;  %s846_s17 = sphi %s902_s17, %s1064_s17   ;;  %s842_s16 = sphi %s900_s16, %s1063_s16   ;;  %s838_s15 = sphi %s898_s15, %s1062_s15  }
   0x5   : > { %p24_p0 = scmp.ge.s32.totalorder %s23_s22, 3  ;;  %s697_s24 = sadd.s32 4294967295, %s862_s21  }
   0x6   : > { %p139_p1 = scmp.ne.s32.totalorder %s842_s16, %s838_s15  ;;  %p140_p2 = scmp.eq.s32.totalorder %s697_s24, 5 }
   0x7   : > { %s1069_s22 = smov (%p24_p0, %s23_s22), 0  ;;  %s1071_s23 = smov (!%p24_p0, %s26_s23), %s858_s20 }
   0x8   : > { %s125_s25 = ssub.s32 %s854_s19, %s1069_s22  ;;  %p28_p3 = scmp.ge.s32.totalorder %s1071_s23, 2 }
   0x9   : > { %p701_p4 = scmp.ge.s32.totalorder %s862_s21, 1  ;;  %p944_p5 = por %p140_p2, %p139_p1 }
   0xa   : > { %p186_p6 = scmp.lt.s32.totalorder %s862_s21, 7  ;;  %s1073_s23 = smov (%p28_p3, %s1071_s23), 0 }
   0xb   : > { %s124_s27 = ssub.s32 %s858_s20, %s1073_s23  ;;  %s129_s29 = sadd.s32 1, %s842_s16 }
   0xc   : > { %p187_p7 = pnand %p701_p4, %p186_p6  ;;  %s126_s28 = sor.u32 %s125_s25, %s124_s27 }
   0xd   : > { %p127_p8 = scmp.eq.s32.totalorder %s126_s28, 0  ;;  %p215_p9 = scmp.lt.s32.totalorder (!%p187_p7), %s850_s18, 1 }
   0xe   : > { %190 = sbr.rel (%p187_p7) target bundleno = 436 (0x1b4), region = 36  ;;  %s705_s5 = sshll.u32 (!%p187_p7), %s846_s17, 9 }
   0xf   : > { %s955_s30 = scalar_select %p127_p8, %s842_s16, %s129_s29  }
  0x10   : > { %s228_s6 = sshra.s32 (!%p187_p7), %s705_s5, 7  ;;  %s864_s14 = smov (!%p187_p7), 59  }
  0x11   : > { %s706_s9 = sshll.u32 (!%p187_p7), %s228_s6, 2  ;;  %s865_s24 = smov (!%p187_p7), 60  }
  0x12   : > { %s866_s25 = smov (!%p187_p7), 92   ;;  %s867_s27 = smov (!%p187_p7), 93  }
  0x13   : > { %s216_s7 = scalar_select %p215_p9, %s850_s18, 1  ;;  %v807_v5 = vld [vmem:[%s1057_s1 + $0x4] ss:$8 sps:$4 sm:$0xff]   ;;  %vm438_vm0 = vcmask 130048   ;;  %v872_v6 = vmov 0   ;;  %vm387_vm1 = vcmask 482304  }
  0x14   : > { %s868_s28 = smov 94   ;;  %s869_s29 = smov 126   ;;  %714 = vmatprep.mubr.msk.bf16.mxu0 %vm438_vm0, %v807_v5  ;;  %715 = vmatprep.mubr.msk.bf16.mxu1 %vm438_vm0, %v807_v5  ;;  %v418_v7 = vld [vmem:[%s1058_s2 + $0x8] sm:$0xff]  ;;  %v417_v8 = vld [vmem:[%s1058_s2] sm:$0xff]  ;;  %vm368_vm2 = vcmask 490496   ;;  %vm349_vm3 = vcmask 752640  }
  0x15   : > { %s729_s8 = smul.u32 104, %s216_s7  ;;  %s870_s5 = smov 127   ;;  %796 = vset.pattern.permute.xlu0 %v872_v6  ;;  %797 = vset.pattern.permute.xlu1 %v872_v6  ;;  %vm330_vm4 = vcmask 760832   ;;  %vm311_vm5 = vcmask 769024   ;;  %vm292_vm6 = vcmask 1031168   ;;  %vm273_vm7 = vcmask 1039360  }
  0x16   : > { %vm406_vm8 = vcmask 474112   ;;  %s730_s6 = smul.u32 (%p944_p5), 24, %s850_s18 }
  0x17   : > { %s219_s12 = scalar_lea.vmem %s1056_s0, %s729_s8  ;;  %s871_s8 = smov 58  }
  0x18   : > { %s231_s13 = scalar_lea.vmem %s219_s12, %s706_s9 }
  0x19   : > { %v963_v0 = vld [vmem:[%s231_s13 + $0xc] ss:$52 sps:$4 sm:$0xff]   ;;  %v965_v1 = vld [vmem:[%s231_s13 + $0x4] ss:$52 sps:$4 sm:$0xff]   ;;  %v969_v3 = vld [vmem:[%s231_s13 + $0x8] ss:$52 sps:$4 sm:$0xff]  }
  0x1a   : > { %383 = vrot.lane.b32.xlu1 %v963_v0, %s864_s14  ;;  %v802_v2 = vld [vmem:[%s231_s13 + $0x10] ss:$52 sps:$4 sm:$0xff]   ;;  %379 = vrot.lane.b32.xlu0 %v965_v1, %s864_s14  ;;  %v972_v4 = vld [vmem:[%s231_s13] ss:$52 sps:$4 sm:$0xff]  }
  0x1e   : > { %385 = vrot.lane.b32.xlu1 %v802_v2, %s864_s14  ;;  %381 = vrot.lane.b32.xlu0 %v969_v3, %s864_s14 }
  0x22   : > { %360 = vrot.lane.b32.xlu1 %v965_v1, %s865_s24  ;;  %377 = vrot.lane.b32.xlu0 %v972_v4, %s864_s14 }
  0x26   : > { %364 = vrot.lane.b32.xlu1 %v963_v0, %s865_s24  ;;  %362 = vrot.lane.b32.xlu0 %v969_v3, %s865_s24 }
  0x2a   : > { %358 = vrot.lane.b32.xlu1 %v972_v4, %s865_s24  ;;  %366 = vrot.lane.b32.xlu0 %v802_v2, %s865_s24  ;;  %s1020_s24 = sshll.u32 %s846_s17, 2  ;;  %s212_s17 = sand.u32 1, %s838_s15  }
  0x2b   : > { %p221_p10 = scmp.lt.s32.totalorder %s1020_s24, 11  ;;  %s595_s7 = sadd.s32 (%p944_p5), %s730_s6, %s1020_s24 }
  0x2e   : > { %343 = vrot.lane.b32.xlu1 %v969_v3, %s866_s25  ;;  %341 = vrot.lane.b32.xlu0 %v965_v1, %s866_s25 }
  0x32   : > { %347 = vrot.lane.b32.xlu1 %v802_v2, %s866_s25  ;;  %345 = vrot.lane.b32.xlu0 %v963_v0, %s866_s25 }
  0x36   : > { %322 = vrot.lane.b32.xlu1 %v965_v1, %s867_s27  ;;  %339 = vrot.lane.b32.xlu0 %v972_v4, %s866_s25  ;;  %s222_s25 = scalar_select %p221_p10, %s1020_s24, 11 }
  0x3a   : > { %326 = vrot.lane.b32.xlu1 %v963_v0, %s867_s27  ;;  %324 = vrot.lane.b32.xlu0 %v969_v3, %s867_s27 }
  0x3e   : > { %320 = vrot.lane.b32.xlu1 %v972_v4, %s867_s27  ;;  %328 = vrot.lane.b32.xlu0 %v802_v2, %s867_s27 }
  0x42   : > { %305 = vrot.lane.b32.xlu1 %v969_v3, %s868_s28  ;;  %303 = vrot.lane.b32.xlu0 %v965_v1, %s868_s28 }
  0x46   : > { %309 = vrot.lane.b32.xlu1 %v802_v2, %s868_s28  ;;  %307 = vrot.lane.b32.xlu0 %v963_v0, %s868_s28 }
  0x4a   : > { %284 = vrot.lane.b32.xlu1 %v965_v1, %s869_s29  ;;  %301 = vrot.lane.b32.xlu0 %v972_v4, %s868_s28 }
  0x4e   : > { %288 = vrot.lane.b32.xlu1 %v963_v0, %s869_s29  ;;  %286 = vrot.lane.b32.xlu0 %v969_v3, %s869_s29 }
  0x52   : > { %282 = vrot.lane.b32.xlu1 %v972_v4, %s869_s29  ;;  %290 = vrot.lane.b32.xlu0 %v802_v2, %s869_s29  ;;  %s223_s29 = scalar_lea.vmem %s1059_s3, %s222_s25 }
  0x56   : > { %267 = vrot.lane.b32.xlu1 %v969_v3, %s870_s5  ;;  %265 = vrot.lane.b32.xlu0 %v965_v1, %s870_s5 }
  0x5a   : > { %271 = vrot.lane.b32.xlu1 %v802_v2, %s870_s5  ;;  %269 = vrot.lane.b32.xlu0 %v963_v0, %s870_s5 }
  0x5e   : > { %398 = vrot.lane.b32.xlu1 %v965_v1, %s871_s8  ;;  %263 = vrot.lane.b32.xlu0 %v972_v4, %s870_s5  ;;  %s702_s5 = sshll.u32 %s212_s17, 5 }
  0x5f   : > { %s214_s15 = scalar_lea.vmem [#allocation2], %s702_s5 }
  0x62   : > { %402 = vrot.lane.b32.xlu1 %v963_v0, %s871_s8  ;;  %400 = vrot.lane.b32.xlu0 %v969_v3, %s871_s8 }
  0x66   : > { %396 = vrot.lane.b32.xlu1 %v972_v4, %s871_s8  ;;  %404 = vrot.lane.b32.xlu0 %v802_v2, %s871_s8  ;;  %s722_s8 = sshll.u32 (%p944_p5), %s595_s7, 2 }
  0x67   : > { %s597_s11 = scalar_lea.vmem (%p944_p5), %s1060_s4, %s722_s8 }
  0x6a   : > { %426 = vperm.xlu1 %797, %v418_v7   ;;  %421 = vperm.xlu0 %796, %v417_v8  }
  0x8c   : > { %v384_v9 = vpop.permute.xlu1 %383  ;;  %v380_v10 = vpop.permute.xlu0 %379 }
  0x90   : > { %v386_v11 = vpop.permute.xlu1 %385  ;;  %v382_v12 = vpop.permute.xlu0 %381 }
  0x91   : > { %v391_v13 = vsel %vm387_vm1, %v384_v9, %v386_v11  ;;  %v389_v14 = vsel %vm387_vm1, %v380_v10, %v382_v12  ;;  %v390_v15 = vsel %vm387_vm1, %v382_v12, %v384_v9 }
  0x92   : > { %485 = vmatprep.subr.bf16.mxu1 %v391_v13  ;;  %442 = vmatprep.subr.bf16.mxu0 %v389_v14 }
  0x93   : > { %486 = vmatpush1.bf16.msra.mxu1 %v390_v15 }
  0x94   : > { %v361_v16 = vpop.permute.xlu1 %360  ;;  %v378_v17 = vpop.permute.xlu0 %377 }
  0x95   : > { %v388_v18 = vsel %vm387_vm1, %v378_v17, %v380_v10 }
  0x96   : > { %443 = vmatpush1.bf16.msra.mxu0 %v388_v18 }
  0x98   : > { %v365_v19 = vpop.permute.xlu1 %364  ;;  %v363_v20 = vpop.permute.xlu0 %362 }
  0x99   : > { %v370_v21 = vsel %vm368_vm2, %v361_v16, %v363_v20  ;;  %v371_v26 = vsel %vm368_vm2, %v363_v20, %v365_v19 }
  0x9a   : > { %444 = vmatprep.subr.bf16.mxu0 %v370_v21  ;;  %v528_v21 = vld [vmem:[%s223_s29] sm:$0xf] }
  0x9c   : > { %v359_v22 = vpop.permute.xlu1 %358  ;;  %v367_v23 = vpop.permute.xlu0 %366 }
  0x9d   : > { %v369_v24 = vsel %vm368_vm2, %v359_v22, %v361_v16  ;;  %v372_v25 = vsel %vm368_vm2, %v365_v19, %v367_v23 }
  0x9e   : > { %445 = vmatpush1.bf16.msra.mxu0 %v369_v24  ;;  %487 = vmatprep.subr.bf16.mxu1 %v372_v25 }
  0x9f   : > { %488 = vmatpush1.bf16.msra.mxu1 %v371_v26 }
  0xa0   : > { %v344_v27 = vpop.permute.xlu1 %343  ;;  %v342_v28 = vpop.permute.xlu0 %341 }
  0xa1   : > { %v351_v29 = vsel %vm349_vm3, %v342_v28, %v344_v27 }
  0xa2   : > { %446 = vmatprep.subr.bf16.mxu0 %v351_v29 }
  0xa4   : > { %v348_v30 = vpop.permute.xlu1 %347  ;;  %v346_v31 = vpop.permute.xlu0 %345 }
  0xa5   : > { %v353_v32 = vsel %vm349_vm3, %v346_v31, %v348_v30  ;;  %v352_v33 = vsel %vm349_vm3, %v344_v27, %v346_v31 }
  0xa6   : > { %489 = vmatprep.subr.bf16.mxu1 %v353_v32 }
  0xa7   : > { %490 = vmatpush1.bf16.msra.mxu1 %v352_v33 }
  0xa8   : > { %v323_v34 = vpop.permute.xlu1 %322  ;;  %v340_v35 = vpop.permute.xlu0 %339 }
  0xa9   : > { %v350_v36 = vsel %vm349_vm3, %v340_v35, %v342_v28 }
  0xaa   : > { %447 = vmatpush1.bf16.msra.mxu0 %v350_v36 }
  0xac   : > { %v327_v37 = vpop.permute.xlu1 %326  ;;  %v325_v38 = vpop.permute.xlu0 %324 }
  0xad   : > { %v332_v39 = vsel %vm330_vm4, %v323_v34, %v325_v38  ;;  %v333_v44 = vsel %vm330_vm4, %v325_v38, %v327_v37 }
  0xae   : > { %448 = vmatprep.subr.bf16.mxu0 %v332_v39 }
  0xb0   : > { %v321_v40 = vpop.permute.xlu1 %320  ;;  %v329_v41 = vpop.permute.xlu0 %328 }
  0xb1   : > { %v331_v42 = vsel %vm330_vm4, %v321_v40, %v323_v34  ;;  %v334_v43 = vsel %vm330_vm4, %v327_v37, %v329_v41 }
  0xb2   : > { %449 = vmatpush1.bf16.msra.mxu0 %v331_v42  ;;  %491 = vmatprep.subr.bf16.mxu1 %v334_v43 }
  0xb3   : > { %492 = vmatpush1.bf16.msra.mxu1 %v333_v44 }
  0xb4   : > { %v306_v45 = vpop.permute.xlu1 %305  ;;  %v304_v46 = vpop.permute.xlu0 %303 }
  0xb5   : > { %v313_v47 = vsel %vm311_vm5, %v304_v46, %v306_v45 }
  0xb6   : > { %450 = vmatprep.subr.bf16.mxu0 %v313_v47 }
  0xb8   : > { %v310_v48 = vpop.permute.xlu1 %309  ;;  %v308_v49 = vpop.permute.xlu0 %307 }
  0xb9   : > { %v315_v50 = vsel %vm311_vm5, %v308_v49, %v310_v48  ;;  %v314_v51 = vsel %vm311_vm5, %v306_v45, %v308_v49 }
  0xba   : > { %493 = vmatprep.subr.bf16.mxu1 %v315_v50 }
  0xbb   : > { %494 = vmatpush1.bf16.msra.mxu1 %v314_v51 }
  0xbc   : > { %v285_v52 = vpop.permute.xlu1 %284  ;;  %v302_v53 = vpop.permute.xlu0 %301 }
  0xbd   : > { %v312_v54 = vsel %vm311_vm5, %v302_v53, %v304_v46 }
  0xbe   : > { %451 = vmatpush1.bf16.msra.mxu0 %v312_v54 }
  0xc0   : > { %v289_v55 = vpop.permute.xlu1 %288  ;;  %v287_v56 = vpop.permute.xlu0 %286 }
  0xc1   : > { %v294_v57 = vsel %vm292_vm6, %v285_v52, %v287_v56  ;;  %v295_v62 = vsel %vm292_vm6, %v287_v56, %v289_v55 }
  0xc2   : > { %452 = vmatprep.subr.bf16.mxu0 %v294_v57 }
  0xc4   : > { %v283_v58 = vpop.permute.xlu1 %282  ;;  %v291_v59 = vpop.permute.xlu0 %290 }
  0xc5   : > { %v293_v60 = vsel %vm292_vm6, %v283_v58, %v285_v52  ;;  %v296_v61 = vsel %vm292_vm6, %v289_v55, %v291_v59 }
  0xc6   : > { %453 = vmatpush1.bf16.msra.mxu0 %v293_v60  ;;  %495 = vmatprep.subr.bf16.mxu1 %v296_v61 }
  0xc7   : > { %496 = vmatpush1.bf16.msra.mxu1 %v295_v62 }
  0xc8   : > { %v268_v63 = vpop.permute.xlu1 %267  ;;  %v266_v2 = vpop.permute.xlu0 %265 }
  0xc9   : > { %v275_v5 = vsel %vm273_vm7, %v266_v2, %v268_v63 }
  0xca   : > { %454 = vmatprep.subr.bf16.mxu0 %v275_v5 }
  0xcc   : > { %v272_v6 = vpop.permute.xlu1 %271  ;;  %v270_v7 = vpop.permute.xlu0 %269 }
  0xcd   : > { %v277_v8 = vsel %vm273_vm7, %v270_v7, %v272_v6  ;;  %v276_v9 = vsel %vm273_vm7, %v268_v63, %v270_v7 }
  0xce   : > { %497 = vmatprep.subr.bf16.mxu1 %v277_v8 }
  0xcf   : > { %498 = vmatpush1.bf16.msra.mxu1 %v276_v9 }
  0xd0   : > { %v399_v10 = vpop.permute.xlu1 %398  ;;  %v264_v11 = vpop.permute.xlu0 %263  ;;  %499 = vmatprep.subr.bf16.mxu1 %v963_v0  ;;  %v805_v0 = vld [vmem:[%s1057_s1] ss:$8 sps:$4 sm:$0xff]  }
  0xd1   : > { %v274_v12 = vsel %vm273_vm7, %v264_v11, %v266_v2 }
  0xd2   : > { %455 = vmatpush1.bf16.msra.mxu0 %v274_v12 }
  0xd3   : > { %456 = vmatprep.subr.bf16.mxu0 %v965_v1  ;;  %500 = vmatpush1.bf16.msra.mxu1 %v969_v3  ;;  %v530_v1 = vlaneseq }
  0xd4   : > { %v403_v13 = vpop.permute.xlu1 %402  ;;  %v401_v14 = vpop.permute.xlu0 %400 }
  0xd5   : > { %v408_v15 = vsel %vm406_vm8, %v399_v10, %v401_v14  ;;  %v409_v20 = vsel %vm406_vm8, %v401_v14, %v403_v13  ;;  %v531_v3 = vshrl.u32 %v530_v1, 7 }
  0xd6   : > { %457 = vmatpush1.bf16.msra.mxu0 %v972_v4 }
  0xd7   : > { %472 = vmatprep.subr.bf16.mxu0 %v408_v15  ;;  %v532_v4 = vsub.s32 0, %v531_v3  ;;  %v536_v22 = vsub.s32 1, %v531_v3  ;;  %v540_v24 = vsub.s32 2, %v531_v3  ;;  %v544_v25 = vsub.s32 3, %v531_v3 }
  0xd8   : > { %v397_v16 = vpop.permute.xlu1 %396  ;;  %v405_v17 = vpop.permute.xlu0 %404 }
  0xd9   : > { %v407_v18 = vsel %vm406_vm8, %v397_v16, %v399_v10  ;;  %v410_v19 = vsel %vm406_vm8, %v403_v13, %v405_v17  ;;  %v533_v26 = vrot.slane %v528_v21, %v532_v4  ;;  %v537_v30 = vrot.slane %v528_v21, %v536_v22 }
  0xda   : > { %473 = vmatpush2.bf16.msra.mxu0 %v407_v18  ;;  %515 = vmatprep.subr.bf16.mxu1 %v410_v19  ;;  %v541_v33 = vrot.slane %v528_v21, %v540_v24  ;;  %v545_v34 = vrot.slane %v528_v21, %v544_v25 }
  0xdb   : > { %516 = vmatpush2.bf16.msra.mxu1 %v409_v20 }
  0xdd   : > { %475 = vmatmul.mubr.bf16.vlgmr.msra.gmra.mxu0 %v805_v0 }
  0xde   : > { %518 = vmatmul.mubr.bf16.vlgmr.msra.gmra.mxu1 %v805_v0 }
  0xe5   : > { %v422_v23 = vpop.permute.xlu0 %421  ;;  %v427_v35 = vpop.permute.xlu1 %426 }
 0x19d   : > { %v476_v27 = vpop.f32.mrf.mxu0 }
 0x19e   : > { %v519_v28 = vpop.f32.mrf.mxu1  ;;  %v477_v29 = vadd.f32 %v476_v27, %v422_v23 }
 0x19f   : > { %v520_v31 = vadd.f32 %v519_v28, %v422_v23  ;;  %v478_v32 = vpop.f32.mrf.mxu0 }
 0x1a0   : > { %v479_v36 = vadd.f32 %v478_v32, %v422_v23  ;;  %v550_v37 = vmul.f32 %v533_v26, %v477_v29  ;;  %v521_v38 = vpop.f32.mrf.mxu1 }
 0x1a1   : > { %v522_v39 = vadd.f32 %v521_v38, %v422_v23  ;;  %v480_v40 = vpop.f32.mrf.mxu0  ;;  %v552_v44 = vmul.f32 %v541_v33, %v520_v31 }
 0x1a2   : > { %v551_v41 = vmul.f32 %v537_v30, %v479_v36  ;;  %v481_v42 = vadd.f32 %v480_v40, %v427_v35  ;;  %v523_v43 = vpop.f32.mrf.mxu1 }
 0x1a3   : > { %v553_v45 = vmul.f32 %v545_v34, %v522_v39  ;;  %v524_v46 = vadd.f32 %v523_v43, %v427_v35  ;;  %v482_v47 = vpop.f32.mrf.mxu0 }
 0x1a4   : > { %v725_v48 = vpack.c.bf16 %v551_v41, %v550_v37  ;;  %v483_v49 = vadd.f32 %v482_v47, %v427_v35  ;;  %v525_v50 = vpop.f32.mrf.mxu1  ;;  %v554_v53 = vmul.f32 %v533_v26, %v481_v42 }
 0x1a5   : > { %v726_v51 = vpack.c.bf16 %v553_v45, %v552_v44  ;;  %v526_v52 = vadd.f32 %v525_v50, %v427_v35  ;;  %v556_v55 = vmul.f32 %v541_v33, %v524_v46 }
 0x1a6   : > { %582 = vst [vmem:[%s214_s15] sm:$0xff] %v725_v48  ;;  %v555_v54 = vmul.f32 %v537_v30, %v483_v49 }
 0x1a7   : > { %583 = vst [vmem:[%s214_s15 + $0x8] sm:$0xff] %v726_v51  ;;  %v557_v56 = vmul.f32 %v545_v34, %v526_v52  ;;  %592 = sbr.rel (!%p944_p5) target bundleno = 436 (0x1b4), region = 40 }
 0x1a8   : > { %v727_v57 = vpack.c.bf16 %v555_v54, %v554_v53 }
 0x1a9   : > { %v728_v58 = vpack.c.bf16 %v557_v56, %v556_v55 }
 0x1aa   : > { %584 = vst [vmem:[%s214_s15 + $0x10] sm:$0xff] %v727_v57 }
 0x1ab   : > { %585 = vst [vmem:[%s214_s15 + $0x18] sm:$0xff] %v728_v58 }
 0x1ad   : > { %v610_v59 = vld [vmem:[%s214_s15] sm:$0xff] }
 0x1ae   : > { %v612_v60 = vld [vmem:[%s214_s15 + $0x8] sm:$0xff]  ;;  %611 = vst [vmem:[%s597_s11] sm:$0xff] %v610_v59 }
 0x1af   : > { %613 = vst [vmem:[%s597_s11 + $0x8] sm:$0xff] %v612_v60 }
 0x1b1   : > { %v614_v61 = vld [vmem:[%s214_s15 + $0x10] sm:$0xff] }
 0x1b2   : > { %v616_v62 = vld [vmem:[%s214_s15 + $0x18] sm:$0xff]  ;;  %615 = vst [vmem:[%s597_s11 + $0x30] sm:$0xff] %v614_v61 }
 0x1b3   : > { %617 = vst [vmem:[%s597_s11 + $0x38] sm:$0xff] %v616_v62 }
 0x1b4 PF: > { %s14_s21 = sadd.s32 1, %s862_s21   ;;  %s1062_s15 = smov %s842_s16 }
 0x1b5   : > { %p11_p11 = scmp.ge.s32.totalorder %s14_s21, 8   ;;  %s1063_s16 = smov %s955_s30 }
 0x1b6   : > { %s1064_s17 = smov %s854_s19  ;;  %s1065_s18 = smov %s858_s20 }
 0x1b7   : > { %s1066_s19 = smov %s1069_s22  ;;  %s1067_s20 = smov %s1073_s23 }
 0x1b8   :  { %13 = sbr.rel (!%p11_p11) target bundleno = 4 (0x4), region = 93 }

// kernel: up_forward.7
= control target key start
LH: loop header
LB: loop body
LE: loop exit
PB: predicated region body
PF: predicated region fallthrough
CT: control target
= control target key end

     0   :  { %s787_s12 = smov 0   ;;  %s789_s13 = smov 0   ;;  %s955_s0 = inlined_call_operand.vmem [shape: bf16[2,16,1606], index: 0, kind: input, shape index: {}]   ;;  %s956_s1 = inlined_call_operand.vmem [shape: bf16[16,144], index: 1, kind: input, shape index: {}]   ;;  %s957_s2 = inlined_call_operand.vmem [shape: f32[16,1], index: 2, kind: input, shape index: {}]   ;;  %s958_s3 = inlined_call_operand.vmem [shape: f32[2,16,1536], index: 3, kind: output, shape index: {}]  }
   0x1   :  { %s791_s14 = smov 0   ;;  %s793_s15 = smov 0  }
   0x2   :  { %s795_s16 = smov 0   ;;  %s797_s17 = smov 0  }
   0x3   :  { %s799_s18 = smov 0  }
   0x4 LB: > { %s22_s19 = sadd.s32 1, %s748_s16  ;;  %s25_s20 = sadd.s32 1, %s752_s17  ;;  %s756_s18 = sphi %s799_s18, %s13_s18   ;;  %s752_s17 = sphi %s797_s17, %s965_s17   ;;  %s748_s16 = sphi %s795_s16, %s964_s16   ;;  %s744_s15 = sphi %s793_s15, %s963_s15   ;;  %s740_s14 = sphi %s791_s14, %s962_s14   ;;  %s736_s13 = sphi %s789_s13, %s961_s13   ;;  %s732_s12 = sphi %s787_s12, %s960_s12  }
   0x5   : > { %p23_p0 = scmp.ge.s32.totalorder %s22_s19, 3  ;;  %s600_s21 = sadd.s32 4294967295, %s756_s18  }
   0x6   : > { %p112_p1 = scmp.ne.s32.totalorder %s736_s13, %s732_s12  ;;  %p113_p2 = scmp.eq.s32.totalorder %s600_s21, 5 }
   0x7   : > { %s967_s19 = smov (%p23_p0, %s22_s19), 0  ;;  %s969_s20 = smov (!%p23_p0, %s25_s20), %s752_s17 }
   0x8   : > { %s98_s22 = ssub.s32 %s748_s16, %s967_s19  ;;  %p27_p3 = scmp.ge.s32.totalorder %s969_s20, 2 }
   0x9   : > { %p604_p4 = scmp.ge.s32.totalorder %s756_s18, 1  ;;  %p833_p5 = por %p113_p2, %p112_p1 }
   0xa   : > { %p151_p6 = scmp.lt.s32.totalorder %s756_s18, 7  ;;  %s971_s20 = smov (%p27_p3, %s969_s20), 0 }
   0xb   : > { %s97_s24 = ssub.s32 %s752_s17, %s971_s20  ;;  %s102_s26 = sadd.s32 1, %s736_s13 }
   0xc   : > { %p152_p7 = pnand %p604_p4, %p151_p6  ;;  %s99_s25 = sor.u32 %s98_s22, %s97_s24 }
   0xd   : > { %p100_p8 = scmp.eq.s32.totalorder %s99_s25, 0  ;;  %p174_p9 = scmp.lt.s32.totalorder (!%p152_p7), %s744_s15, 1 }
   0xe   : > { %155 = sbr.rel (%p152_p7) target bundleno = 432 (0x1b0), region = 32  ;;  %s607_s28 = sshll.u32 (!%p152_p7), %s740_s14, 9 }
   0xf   : > { %s844_s27 = scalar_select %p100_p8, %s736_s13, %s102_s26  }
  0x10   : > { %s182_s29 = sshra.s32 (!%p152_p7), %s607_s28, 7  ;;  %s758_s10 = smov (!%p152_p7), 59  }
  0x11   : > { %s608_s5 = sshll.u32 (!%p152_p7), %s182_s29, 2  ;;  %s759_s11 = smov (!%p152_p7), 60  }
  0x12   : > { %s760_s21 = smov (!%p152_p7), 92   ;;  %s761_s22 = smov (!%p152_p7), 93  }
  0x13   : > { %s175_s30 = scalar_select %p174_p9, %s744_s15, 1  ;;  %v701_v5 = vld [vmem:[%s956_s1 + $0x4] ss:$8 sps:$4 sm:$0xff]   ;;  %vm392_vm0 = vcmask 130048   ;;  %v766_v6 = vmov 0   ;;  %vm341_vm1 = vcmask 482304  }
  0x14   : > { %s762_s24 = smov 94   ;;  %s763_s25 = smov 126   ;;  %616 = vmatprep.mubr.msk.bf16.mxu0 %vm392_vm0, %v701_v5  ;;  %617 = vmatprep.mubr.msk.bf16.mxu1 %vm392_vm0, %v701_v5  ;;  %v372_v7 = vld [vmem:[%s957_s2 + $0x8] sm:$0xff]  ;;  %v371_v8 = vld [vmem:[%s957_s2] sm:$0xff]  ;;  %vm322_vm2 = vcmask 490496   ;;  %vm303_vm3 = vcmask 752640  }
  0x15   : > { %s623_s4 = smul.u32 104, %s175_s30  ;;  %s764_s26 = smov 127   ;;  %690 = vset.pattern.permute.xlu0 %v766_v6  ;;  %691 = vset.pattern.permute.xlu1 %v766_v6  ;;  %vm284_vm4 = vcmask 760832   ;;  %vm265_vm5 = vcmask 769024   ;;  %vm246_vm6 = vcmask 1031168   ;;  %vm227_vm7 = vcmask 1039360  }
  0x16   : > { %s765_s30 = smov 58   ;;  %vm360_vm8 = vcmask 474112  }
  0x17   : > { %s178_s8 = scalar_lea.vmem %s955_s0, %s623_s4 }
  0x18   : > { %s185_s9 = scalar_lea.vmem %s178_s8, %s608_s5 }
  0x19   : > { %v852_v0 = vld [vmem:[%s185_s9 + $0xc] ss:$52 sps:$4 sm:$0xff]   ;;  %v854_v1 = vld [vmem:[%s185_s9 + $0x4] ss:$52 sps:$4 sm:$0xff]   ;;  %v858_v3 = vld [vmem:[%s185_s9 + $0x8] ss:$52 sps:$4 sm:$0xff]  }
  0x1a   : > { %337 = vrot.lane.b32.xlu1 %v852_v0, %s758_s10  ;;  %v696_v2 = vld [vmem:[%s185_s9 + $0x10] ss:$52 sps:$4 sm:$0xff]   ;;  %333 = vrot.lane.b32.xlu0 %v854_v1, %s758_s10  ;;  %v861_v4 = vld [vmem:[%s185_s9] ss:$52 sps:$4 sm:$0xff]  }
  0x1e   : > { %339 = vrot.lane.b32.xlu1 %v696_v2, %s758_s10  ;;  %335 = vrot.lane.b32.xlu0 %v858_v3, %s758_s10 }
  0x22   : > { %314 = vrot.lane.b32.xlu1 %v854_v1, %s759_s11  ;;  %331 = vrot.lane.b32.xlu0 %v861_v4, %s758_s10  ;;  %s171_s10 = sand.u32 1, %s732_s12   ;;  %s619_s12 = sshll.u32 (%p833_p5), %s740_s14, 2 }
  0x26   : > { %318 = vrot.lane.b32.xlu1 %v852_v0, %s759_s11  ;;  %316 = vrot.lane.b32.xlu0 %v858_v3, %s759_s11 }
  0x2a   : > { %312 = vrot.lane.b32.xlu1 %v861_v4, %s759_s11  ;;  %320 = vrot.lane.b32.xlu0 %v696_v2, %s759_s11  ;;  %s605_s11 = sshll.u32 %s171_s10, 6 }
  0x2e   : > { %297 = vrot.lane.b32.xlu1 %v858_v3, %s760_s21  ;;  %295 = vrot.lane.b32.xlu0 %v854_v1, %s760_s21 }
  0x32   : > { %301 = vrot.lane.b32.xlu1 %v696_v2, %s760_s21  ;;  %299 = vrot.lane.b32.xlu0 %v852_v0, %s760_s21 }
  0x36   : > { %276 = vrot.lane.b32.xlu1 %v854_v1, %s761_s22  ;;  %293 = vrot.lane.b32.xlu0 %v861_v4, %s760_s21  ;;  %s909_s21 = scalar_lea.vmem [#allocation2], %s605_s11 }
  0x3a   : > { %280 = vrot.lane.b32.xlu1 %v852_v0, %s761_s22  ;;  %278 = vrot.lane.b32.xlu0 %v858_v3, %s761_s22 }
  0x3e   : > { %274 = vrot.lane.b32.xlu1 %v861_v4, %s761_s22  ;;  %282 = vrot.lane.b32.xlu0 %v696_v2, %s761_s22  ;;  %s624_s22 = smul.u32 (%p833_p5), 24, %s744_s15 }
  0x42   : > { %259 = vrot.lane.b32.xlu1 %v858_v3, %s762_s24  ;;  %257 = vrot.lane.b32.xlu0 %v854_v1, %s762_s24 }
  0x46   : > { %263 = vrot.lane.b32.xlu1 %v696_v2, %s762_s24  ;;  %261 = vrot.lane.b32.xlu0 %v852_v0, %s762_s24 }
  0x4a   : > { %238 = vrot.lane.b32.xlu1 %v854_v1, %s763_s25  ;;  %255 = vrot.lane.b32.xlu0 %v861_v4, %s762_s24  ;;  %s499_s24 = sadd.s32 (%p833_p5), %s624_s22, %s619_s12 }
  0x4b   : > { %s620_s23 = sshll.u32 (%p833_p5), %s499_s24, 3 }
  0x4c   : > { %s501_s28 = scalar_lea.vmem (%p833_p5), %s958_s3, %s620_s23 }
  0x4e   : > { %242 = vrot.lane.b32.xlu1 %v852_v0, %s763_s25  ;;  %240 = vrot.lane.b32.xlu0 %v858_v3, %s763_s25 }
  0x52   : > { %236 = vrot.lane.b32.xlu1 %v861_v4, %s763_s25  ;;  %244 = vrot.lane.b32.xlu0 %v696_v2, %s763_s25 }
  0x56   : > { %221 = vrot.lane.b32.xlu1 %v858_v3, %s764_s26  ;;  %219 = vrot.lane.b32.xlu0 %v854_v1, %s764_s26 }
  0x5a   : > { %225 = vrot.lane.b32.xlu1 %v696_v2, %s764_s26  ;;  %223 = vrot.lane.b32.xlu0 %v852_v0, %s764_s26 }
  0x5e   : > { %352 = vrot.lane.b32.xlu1 %v854_v1, %s765_s30  ;;  %217 = vrot.lane.b32.xlu0 %v861_v4, %s764_s26 }
  0x62   : > { %356 = vrot.lane.b32.xlu1 %v852_v0, %s765_s30  ;;  %354 = vrot.lane.b32.xlu0 %v858_v3, %s765_s30 }
  0x66   : > { %350 = vrot.lane.b32.xlu1 %v861_v4, %s765_s30  ;;  %358 = vrot.lane.b32.xlu0 %v696_v2, %s765_s30 }
  0x6a   : > { %380 = vperm.xlu1 %691, %v372_v7   ;;  %375 = vperm.xlu0 %690, %v371_v8  }
  0x8c   : > { %v338_v9 = vpop.permute.xlu1 %337  ;;  %v334_v10 = vpop.permute.xlu0 %333 }
  0x90   : > { %v340_v11 = vpop.permute.xlu1 %339  ;;  %v336_v12 = vpop.permute.xlu0 %335 }
  0x91   : > { %v345_v13 = vsel %vm341_vm1, %v338_v9, %v340_v11  ;;  %v343_v14 = vsel %vm341_vm1, %v334_v10, %v336_v12  ;;  %v344_v15 = vsel %vm341_vm1, %v336_v12, %v338_v9 }
  0x92   : > { %439 = vmatprep.subr.bf16.mxu1 %v345_v13  ;;  %396 = vmatprep.subr.bf16.mxu0 %v343_v14 }
  0x93   : > { %440 = vmatpush1.bf16.msra.mxu1 %v344_v15 }
  0x94   : > { %v315_v16 = vpop.permute.xlu1 %314  ;;  %v332_v17 = vpop.permute.xlu0 %331 }
  0x95   : > { %v342_v18 = vsel %vm341_vm1, %v332_v17, %v334_v10 }
  0x96   : > { %397 = vmatpush1.bf16.msra.mxu0 %v342_v18 }
  0x98   : > { %v319_v19 = vpop.permute.xlu1 %318  ;;  %v317_v20 = vpop.permute.xlu0 %316 }
  0x99   : > { %v324_v21 = vsel %vm322_vm2, %v315_v16, %v317_v20  ;;  %v325_v26 = vsel %vm322_vm2, %v317_v20, %v319_v19 }
  0x9a   : > { %398 = vmatprep.subr.bf16.mxu0 %v324_v21 }
  0x9c   : > { %v313_v22 = vpop.permute.xlu1 %312  ;;  %v321_v23 = vpop.permute.xlu0 %320 }
  0x9d   : > { %v323_v24 = vsel %vm322_vm2, %v313_v22, %v315_v16  ;;  %v326_v25 = vsel %vm322_vm2, %v319_v19, %v321_v23 }
  0x9e   : > { %399 = vmatpush1.bf16.msra.mxu0 %v323_v24  ;;  %441 = vmatprep.subr.bf16.mxu1 %v326_v25 }
  0x9f   : > { %442 = vmatpush1.bf16.msra.mxu1 %v325_v26 }
  0xa0   : > { %v298_v27 = vpop.permute.xlu1 %297  ;;  %v296_v28 = vpop.permute.xlu0 %295 }
  0xa1   : > { %v305_v29 = vsel %vm303_vm3, %v296_v28, %v298_v27 }
  0xa2   : > { %400 = vmatprep.subr.bf16.mxu0 %v305_v29 }
  0xa4   : > { %v302_v30 = vpop.permute.xlu1 %301  ;;  %v300_v31 = vpop.permute.xlu0 %299 }
  0xa5   : > { %v307_v32 = vsel %vm303_vm3, %v300_v31, %v302_v30  ;;  %v306_v33 = vsel %vm303_vm3, %v298_v27, %v300_v31 }
  0xa6   : > { %443 = vmatprep.subr.bf16.mxu1 %v307_v32 }
  0xa7   : > { %444 = vmatpush1.bf16.msra.mxu1 %v306_v33 }
  0xa8   : > { %v277_v34 = vpop.permute.xlu1 %276  ;;  %v294_v35 = vpop.permute.xlu0 %293 }
  0xa9   : > { %v304_v36 = vsel %vm303_vm3, %v294_v35, %v296_v28 }
  0xaa   : > { %401 = vmatpush1.bf16.msra.mxu0 %v304_v36 }
  0xac   : > { %v281_v37 = vpop.permute.xlu1 %280  ;;  %v279_v38 = vpop.permute.xlu0 %278 }
  0xad   : > { %v286_v39 = vsel %vm284_vm4, %v277_v34, %v279_v38  ;;  %v287_v44 = vsel %vm284_vm4, %v279_v38, %v281_v37 }
  0xae   : > { %402 = vmatprep.subr.bf16.mxu0 %v286_v39 }
  0xb0   : > { %v275_v40 = vpop.permute.xlu1 %274  ;;  %v283_v41 = vpop.permute.xlu0 %282 }
  0xb1   : > { %v285_v42 = vsel %vm284_vm4, %v275_v40, %v277_v34  ;;  %v288_v43 = vsel %vm284_vm4, %v281_v37, %v283_v41 }
  0xb2   : > { %403 = vmatpush1.bf16.msra.mxu0 %v285_v42  ;;  %445 = vmatprep.subr.bf16.mxu1 %v288_v43 }
  0xb3   : > { %446 = vmatpush1.bf16.msra.mxu1 %v287_v44 }
  0xb4   : > { %v260_v45 = vpop.permute.xlu1 %259  ;;  %v258_v46 = vpop.permute.xlu0 %257 }
  0xb5   : > { %v267_v47 = vsel %vm265_vm5, %v258_v46, %v260_v45 }
  0xb6   : > { %404 = vmatprep.subr.bf16.mxu0 %v267_v47 }
  0xb8   : > { %v264_v48 = vpop.permute.xlu1 %263  ;;  %v262_v49 = vpop.permute.xlu0 %261 }
  0xb9   : > { %v269_v50 = vsel %vm265_vm5, %v262_v49, %v264_v48  ;;  %v268_v51 = vsel %vm265_vm5, %v260_v45, %v262_v49 }
  0xba   : > { %447 = vmatprep.subr.bf16.mxu1 %v269_v50 }
  0xbb   : > { %448 = vmatpush1.bf16.msra.mxu1 %v268_v51 }
  0xbc   : > { %v239_v52 = vpop.permute.xlu1 %238  ;;  %v256_v53 = vpop.permute.xlu0 %255 }
  0xbd   : > { %v266_v54 = vsel %vm265_vm5, %v256_v53, %v258_v46 }
  0xbe   : > { %405 = vmatpush1.bf16.msra.mxu0 %v266_v54 }
  0xc0   : > { %v243_v55 = vpop.permute.xlu1 %242  ;;  %v241_v56 = vpop.permute.xlu0 %240 }
  0xc1   : > { %v248_v57 = vsel %vm246_vm6, %v239_v52, %v241_v56  ;;  %v249_v62 = vsel %vm246_vm6, %v241_v56, %v243_v55 }
  0xc2   : > { %406 = vmatprep.subr.bf16.mxu0 %v248_v57 }
  0xc4   : > { %v237_v58 = vpop.permute.xlu1 %236  ;;  %v245_v59 = vpop.permute.xlu0 %244 }
  0xc5   : > { %v247_v60 = vsel %vm246_vm6, %v237_v58, %v239_v52  ;;  %v250_v61 = vsel %vm246_vm6, %v243_v55, %v245_v59 }
  0xc6   : > { %407 = vmatpush1.bf16.msra.mxu0 %v247_v60  ;;  %449 = vmatprep.subr.bf16.mxu1 %v250_v61 }
  0xc7   : > { %450 = vmatpush1.bf16.msra.mxu1 %v249_v62 }
  0xc8   : > { %v222_v63 = vpop.permute.xlu1 %221  ;;  %v220_v2 = vpop.permute.xlu0 %219 }
  0xc9   : > { %v229_v5 = vsel %vm227_vm7, %v220_v2, %v222_v63 }
  0xca   : > { %408 = vmatprep.subr.bf16.mxu0 %v229_v5 }
  0xcc   : > { %v226_v6 = vpop.permute.xlu1 %225  ;;  %v224_v7 = vpop.permute.xlu0 %223 }
  0xcd   : > { %v231_v8 = vsel %vm227_vm7, %v224_v7, %v226_v6  ;;  %v230_v9 = vsel %vm227_vm7, %v222_v63, %v224_v7 }
  0xce   : > { %451 = vmatprep.subr.bf16.mxu1 %v231_v8 }
  0xcf   : > { %452 = vmatpush1.bf16.msra.mxu1 %v230_v9 }
  0xd0   : > { %v353_v10 = vpop.permute.xlu1 %352  ;;  %v218_v11 = vpop.permute.xlu0 %217  ;;  %453 = vmatprep.subr.bf16.mxu1 %v852_v0  ;;  %v699_v0 = vld [vmem:[%s956_s1] ss:$8 sps:$4 sm:$0xff]  }
  0xd1   : > { %v228_v12 = vsel %vm227_vm7, %v218_v11, %v220_v2 }
  0xd2   : > { %409 = vmatpush1.bf16.msra.mxu0 %v228_v12 }
  0xd3   : > { %410 = vmatprep.subr.bf16.mxu0 %v854_v1  ;;  %454 = vmatpush1.bf16.msra.mxu1 %v858_v3 }
  0xd4   : > { %v357_v13 = vpop.permute.xlu1 %356  ;;  %v355_v14 = vpop.permute.xlu0 %354 }
  0xd5   : > { %v362_v15 = vsel %vm360_vm8, %v353_v10, %v355_v14  ;;  %v363_v20 = vsel %vm360_vm8, %v355_v14, %v357_v13 }
  0xd6   : > { %411 = vmatpush1.bf16.msra.mxu0 %v861_v4 }
  0xd7   : > { %426 = vmatprep.subr.bf16.mxu0 %v362_v15 }
  0xd8   : > { %v351_v16 = vpop.permute.xlu1 %350  ;;  %v359_v17 = vpop.permute.xlu0 %358 }
  0xd9   : > { %v361_v18 = vsel %vm360_vm8, %v351_v16, %v353_v10  ;;  %v364_v19 = vsel %vm360_vm8, %v357_v13, %v359_v17 }
  0xda   : > { %427 = vmatpush2.bf16.msra.mxu0 %v361_v18  ;;  %469 = vmatprep.subr.bf16.mxu1 %v364_v19 }
  0xdb   : > { %470 = vmatpush2.bf16.msra.mxu1 %v363_v20 }
  0xdd   : > { %429 = vmatmul.mubr.bf16.vlgmr.msra.gmra.mxu0 %v699_v0 }
  0xde   : > { %472 = vmatmul.mubr.bf16.vlgmr.msra.gmra.mxu1 %v699_v0 }
  0xe5   : > { %v376_v1 = vpop.permute.xlu0 %375  ;;  %v381_v24 = vpop.permute.xlu1 %380 }
 0x19d   : > { %v430_v3 = vpop.f32.mrf.mxu0 }
 0x19e   : > { %v473_v4 = vpop.f32.mrf.mxu1  ;;  %v431_v21 = vadd.f32 %v430_v3, %v376_v1 }
 0x19f   : > { %v474_v22 = vadd.f32 %v473_v4, %v376_v1  ;;  %v432_v23 = vpop.f32.mrf.mxu0 }
 0x1a0   : > { %482 = vst [vmem:[%s909_s21] sm:$0xff] %v431_v21  ;;  %v433_v25 = vadd.f32 %v432_v23, %v376_v1  ;;  %v475_v26 = vpop.f32.mrf.mxu1 }
 0x1a1   : > { %484 = vst [vmem:[%s909_s21 + $0x10] sm:$0xff] %v474_v22  ;;  %v476_v27 = vadd.f32 %v475_v26, %v376_v1  ;;  %v434_v28 = vpop.f32.mrf.mxu0 }
 0x1a2   : > { %483 = vst [vmem:[%s909_s21 + $0x8] sm:$0xff] %v433_v25  ;;  %v435_v29 = vadd.f32 %v434_v28, %v381_v24  ;;  %v477_v30 = vpop.f32.mrf.mxu1 }
 0x1a3   : > { %485 = vst [vmem:[%s909_s21 + $0x18] sm:$0xff] %v476_v27  ;;  %v478_v31 = vadd.f32 %v477_v30, %v381_v24  ;;  %v436_v32 = vpop.f32.mrf.mxu0  ;;  %496 = sbr.rel (!%p833_p5) target bundleno = 432 (0x1b0), region = 36 }
 0x1a4   : > { %486 = vst [vmem:[%s909_s21 + $0x20] sm:$0xff] %v435_v29  ;;  %v437_v33 = vadd.f32 %v436_v32, %v381_v24  ;;  %v479_v34 = vpop.f32.mrf.mxu1 }
 0x1a5   : > { %488 = vst [vmem:[%s909_s21 + $0x30] sm:$0xff] %v478_v31  ;;  %v480_v35 = vadd.f32 %v479_v34, %v381_v24 }
 0x1a6   : > { %487 = vst [vmem:[%s909_s21 + $0x28] sm:$0xff] %v437_v33 }
 0x1a7   : > { %489 = vst [vmem:[%s909_s21 + $0x38] sm:$0xff] %v480_v35  ;;  %v514_v36 = vld [vmem:[%s909_s21] sm:$0xff] (%p833_p5) }
 0x1a8   : > { %v518_v38 = vld [vmem:[%s909_s21 + $0x10] sm:$0xff]  ;;  %515 = vst [vmem:[%s501_s28] sm:$0xff] %v514_v36 }
 0x1a9   : > { %v516_v37 = vld [vmem:[%s909_s21 + $0x8] sm:$0xff]  ;;  %519 = vst [vmem:[%s501_s28 + $0x10] sm:$0xff] %v518_v38 }
 0x1aa   : > { %v520_v39 = vld [vmem:[%s909_s21 + $0x18] sm:$0xff]  ;;  %517 = vst [vmem:[%s501_s28 + $0x8] sm:$0xff] %v516_v37 }
 0x1ab   : > { %v522_v40 = vld [vmem:[%s909_s21 + $0x20] sm:$0xff]  ;;  %521 = vst [vmem:[%s501_s28 + $0x18] sm:$0xff] %v520_v39 }
 0x1ac   : > { %v526_v42 = vld [vmem:[%s909_s21 + $0x30] sm:$0xff]  ;;  %523 = vst [vmem:[%s501_s28 + $0x60] sm:$0xff] %v522_v40 }
 0x1ad   : > { %v524_v41 = vld [vmem:[%s909_s21 + $0x28] sm:$0xff]  ;;  %527 = vst [vmem:[%s501_s28 + $0x70] sm:$0xff] %v526_v42 }
 0x1ae   : > { %v528_v43 = vld [vmem:[%s909_s21 + $0x38] sm:$0xff]  ;;  %525 = vst [vmem:[%s501_s28 + $0x68] sm:$0xff] %v524_v41 }
 0x1af   : > { %529 = vst [vmem:[%s501_s28 + $0x78] sm:$0xff] %v528_v43 }
 0x1b0 PF: > { %s13_s18 = sadd.s32 1, %s756_s18   ;;  %s960_s12 = smov %s736_s13 }
 0x1b1   : > { %p10_p10 = scmp.ge.s32.totalorder %s13_s18, 8   ;;  %s961_s13 = smov %s844_s27 }
 0x1b2   : > { %s962_s14 = smov %s748_s16  ;;  %s963_s15 = smov %s752_s17 }
 0x1b3   : > { %s964_s16 = smov %s967_s19  ;;  %s965_s17 = smov %s971_s20 }
 0x1b4   :  { %12 = sbr.rel (!%p10_p10) target bundleno = 4 (0x4), region = 86 }

// kernel: up_forward.6
= control target key start
LH: loop header
LB: loop body
LE: loop exit
PB: predicated region body
PF: predicated region fallthrough
CT: control target
= control target key end

     0   :  { %s1275_s18 = smov 0   ;;  %s1277_s19 = smov 0   ;;  %s1742_s0 = inlined_call_operand.vmem [shape: bf16[2,16,1606], index: 0, kind: input, shape index: {}]   ;;  %s1743_s1 = inlined_call_operand.vmem [shape: bf16[2,16,1606], index: 1, kind: input, shape index: {}]   ;;  %s1744_s2 = inlined_call_operand.vmem [shape: bf16[16,288], index: 2, kind: input, shape index: {}]   ;;  %s1745_s3 = inlined_call_operand.vmem [shape: f32[16,1], index: 3, kind: input, shape index: {}]   ;;  %s1746_s4 = inlined_call_operand.vmem [shape: f32[1,1536], index: 4, kind: input, shape index: {}]   ;;  %s1747_s5 = inlined_call_operand.vmem [shape: bf16[2,16,1536], index: 5, kind: output, shape index: {}]  }
   0x1   :  { %s1279_s20 = smov 0   ;;  %s1281_s21 = smov 0  }
   0x2   :  { %s1283_s22 = smov 0   ;;  %s1285_s23 = smov 0  }
   0x3   :  { %s1287_s24 = smov 0  }
   0x4 LB: > { %s24_s25 = sadd.s32 1, %s1226_s22  ;;  %s27_s26 = sadd.s32 1, %s1230_s23  ;;  %s1234_s24 = sphi %s1287_s24, %s15_s24   ;;  %s1230_s23 = sphi %s1285_s23, %s1754_s23   ;;  %s1226_s22 = sphi %s1283_s22, %s1753_s22   ;;  %s1222_s21 = sphi %s1281_s21, %s1752_s21   ;;  %s1218_s20 = sphi %s1279_s20, %s1751_s20   ;;  %s1214_s19 = sphi %s1277_s19, %s1750_s19   ;;  %s1210_s18 = sphi %s1275_s18, %s1749_s18  }
   0x5   : > { %p25_p0 = scmp.ge.s32.totalorder %s24_s25, 3  ;;  %s1053_s27 = sadd.s32 4294967295, %s1234_s24  }
   0x6   : > { %p166_p1 = scmp.ne.s32.totalorder %s1214_s19, %s1210_s18  ;;  %p167_p2 = scmp.eq.s32.totalorder %s1053_s27, 5 }
   0x7   : > { %s1756_s25 = smov (%p25_p0, %s24_s25), 0  ;;  %s1758_s26 = smov (!%p25_p0, %s27_s26), %s1230_s23 }
   0x8   : > { %s152_s28 = ssub.s32 %s1226_s22, %s1756_s25  ;;  %p29_p3 = scmp.ge.s32.totalorder %s1758_s26, 2 }
   0x9   : > { %p1057_p4 = scmp.ge.s32.totalorder %s1234_s24, 1  ;;  %p1321_p5 = por %p167_p2, %p166_p1 }
   0xa   : > { %p221_p6 = scmp.lt.s32.totalorder %s1234_s24, 7  ;;  %s1760_s26 = smov (%p29_p3, %s1758_s26), 0 }
   0xb   : > { %s151_s30 = ssub.s32 %s1230_s23, %s1760_s26  ;;  %s156_s7 = sadd.s32 1, %s1214_s19 }
   0xc   : > { %p222_p7 = pnand %p1057_p4, %p221_p6  ;;  %s153_s6 = sor.u32 %s152_s28, %s151_s30 }
   0xd   : > { %p154_p8 = scmp.eq.s32.totalorder %s153_s6, 0  ;;  %p257_p9 = scmp.lt.s32.totalorder (!%p222_p7), %s1222_s21, 1 }
   0xe   : > { %225 = sbr.rel (%p222_p7) target bundleno = 559 (0x22f), region = 40  ;;  %s1062_s9 = sshll.u32 (!%p222_p7), %s1218_s20, 9 }
   0xf   : > { %s1332_s8 = scalar_select %p154_p8, %s1214_s19, %s156_s7  }
  0x10   : > { %s275_s10 = sshra.s32 (!%p222_p7), %s1062_s9, 7  ;;  %s1236_s7 = smov (!%p222_p7), 127  }
  0x11   : > { %s1063_s13 = sshll.u32 (!%p222_p7), %s275_s10, 2  ;;  %s1237_s9 = smov (!%p222_p7), 59  }
  0x12   : > { %s1238_s10 = smov (!%p222_p7), 60   ;;  %s1242_s14 = smov (!%p222_p7), 126  }
  0x13   : > { %s258_s11 = scalar_select %p257_p9, %s1222_s21, 1  ;;  %vm328_vm0 = vcmask 1039360   ;;  %v1243_v14 = vmov 0   ;;  %vm442_vm1 = vcmask 482304   ;;  %vm423_vm2 = vcmask 490496  }
  0x14   : > { %749 = vmatprep.mubr.bf16.mxu1 %v1243_v14  ;;  %1160 = vset.pattern.permute.xlu0 %v1243_v14  ;;  %vm404_vm3 = vcmask 752640   ;;  %vm385_vm4 = vcmask 760832   ;;  %vm366_vm5 = vcmask 769024   ;;  %v1560_v63 = vld [vmem:[%s1744_s2 + $0x4] ss:$12 sps:$4 sm:$0xff]   ;;  %vm347_vm6 = vcmask 1031168  }
  0x15   : > { %s1093_s12 = smul.u32 104, %s258_s11  ;;  %s1239_s11 = smov 92   ;;  %1161 = vset.pattern.permute.xlu1 %v1243_v14  ;;  %706 = vmatprep.mubr.bf16.mxu0 %v1560_v63  ;;  %vm670_vm7 = vcmask 261120   ;;  %vm461_vm8 = vcmask 474112  }
  0x16   : > { %s1244_s17 = smov 58   ;;  %s1094_s27 = smul.u32 (%p1321_p5), 24, %s1222_s21 }
  0x17   : > { %s266_s16 = scalar_lea.vmem %s1743_s1, %s1093_s12  ;;  %s261_s28 = scalar_lea.vmem %s1742_s0, %s1093_s12 }
  0x18   : > { %s286_s30 = scalar_lea.vmem %s266_s16, %s1063_s13  ;;  %s278_s6 = scalar_lea.vmem %s261_s28, %s1063_s13 }
  0x19   : > { %v1343_v0 = vld [vmem:[%s286_s30 + $0xc] ss:$52 sps:$4 sm:$0xff]   ;;  %v1345_v1 = vld [vmem:[%s286_s30 + $0x4] ss:$52 sps:$4 sm:$0xff]   ;;  %v1353_v3 = vld [vmem:[%s286_s30 + $0x8] ss:$52 sps:$4 sm:$0xff]  }
  0x1a   : > { %501 = vrot.lane.b32.xlu1 %v1343_v0, %s1236_s7  ;;  %v1349_v2 = vld [vmem:[%s286_s30] ss:$52 sps:$4 sm:$0xff]   ;;  %497 = vrot.lane.b32.xlu0 %v1345_v1, %s1236_s7  ;;  %v1357_v4 = vld [vmem:[%s278_s6 + $0x4] ss:$52 sps:$4 sm:$0xff]   ;;  %s1240_s12 = smov 93   ;;  %s1241_s13 = smov 94  }
  0x1b   : > { %v1361_v5 = vld [vmem:[%s278_s6 + $0x8] ss:$52 sps:$4 sm:$0xff]   ;;  %v1365_v6 = vld [vmem:[%s278_s6] ss:$52 sps:$4 sm:$0xff]   ;;  %v1381_v7 = vld [vmem:[%s286_s30 + $0x10] ss:$52 sps:$4 sm:$0xff]  }
  0x1c   : > { %v1385_v8 = vld [vmem:[%s278_s6 + $0xc] ss:$52 sps:$4 sm:$0xff]   ;;  %v1389_v9 = vld [vmem:[%s278_s6 + $0x10] ss:$52 sps:$4 sm:$0xff]  }
  0x1e   : > { %495 = vrot.lane.b32.xlu1 %v1349_v2, %s1236_s7  ;;  %499 = vrot.lane.b32.xlu0 %v1353_v3, %s1236_s7 }
  0x22   : > { %434 = vrot.lane.b32.xlu1 %v1357_v4, %s1237_s9  ;;  %436 = vrot.lane.b32.xlu0 %v1361_v5, %s1237_s9 }
  0x26   : > { %432 = vrot.lane.b32.xlu1 %v1365_v6, %s1237_s9  ;;  %605 = vrot.lane.b32.xlu0 %v1345_v1, %s1237_s9 }
  0x2a   : > { %607 = vrot.lane.b32.xlu1 %v1353_v3, %s1237_s9  ;;  %603 = vrot.lane.b32.xlu0 %v1349_v2, %s1237_s9 }
  0x2e   : > { %415 = vrot.lane.b32.xlu1 %v1357_v4, %s1238_s10  ;;  %417 = vrot.lane.b32.xlu0 %v1361_v5, %s1238_s10 }
  0x32   : > { %413 = vrot.lane.b32.xlu1 %v1365_v6, %s1238_s10  ;;  %503 = vrot.lane.b32.xlu0 %v1381_v7, %s1236_s7 }
  0x36   : > { %438 = vrot.lane.b32.xlu1 %v1385_v8, %s1237_s9  ;;  %440 = vrot.lane.b32.xlu0 %v1389_v9, %s1237_s9 }
  0x3a   : > { %396 = vrot.lane.b32.xlu1 %v1357_v4, %s1239_s11  ;;  %398 = vrot.lane.b32.xlu0 %v1361_v5, %s1239_s11 }
  0x3e   : > { %394 = vrot.lane.b32.xlu1 %v1365_v6, %s1239_s11  ;;  %419 = vrot.lane.b32.xlu0 %v1385_v8, %s1238_s10 }
  0x42   : > { %421 = vrot.lane.b32.xlu1 %v1389_v9, %s1238_s10  ;;  %377 = vrot.lane.b32.xlu0 %v1357_v4, %s1240_s12 }
  0x46   : > { %379 = vrot.lane.b32.xlu1 %v1361_v5, %s1240_s12  ;;  %375 = vrot.lane.b32.xlu0 %v1365_v6, %s1240_s12 }
  0x4a   : > { %400 = vrot.lane.b32.xlu1 %v1385_v8, %s1239_s11  ;;  %402 = vrot.lane.b32.xlu0 %v1389_v9, %s1239_s11 }
  0x4e   : > { %358 = vrot.lane.b32.xlu1 %v1357_v4, %s1241_s13  ;;  %360 = vrot.lane.b32.xlu0 %v1361_v5, %s1241_s13 }
  0x52   : > { %356 = vrot.lane.b32.xlu1 %v1365_v6, %s1241_s13  ;;  %381 = vrot.lane.b32.xlu0 %v1385_v8, %s1240_s12 }
  0x56   : > { %383 = vrot.lane.b32.xlu1 %v1389_v9, %s1240_s12  ;;  %339 = vrot.lane.b32.xlu0 %v1357_v4, %s1242_s14 }
  0x5a   : > { %341 = vrot.lane.b32.xlu1 %v1361_v5, %s1242_s14  ;;  %337 = vrot.lane.b32.xlu0 %v1365_v6, %s1242_s14 }
  0x5e   : > { %362 = vrot.lane.b32.xlu1 %v1385_v8, %s1241_s13  ;;  %364 = vrot.lane.b32.xlu0 %v1389_v9, %s1241_s13 }
  0x62   : > { %320 = vrot.lane.b32.xlu1 %v1357_v4, %s1236_s7  ;;  %322 = vrot.lane.b32.xlu0 %v1361_v5, %s1236_s7 }
  0x66   : > { %318 = vrot.lane.b32.xlu1 %v1365_v6, %s1236_s7  ;;  %343 = vrot.lane.b32.xlu0 %v1385_v8, %s1242_s14 }
  0x6a   : > { %345 = vrot.lane.b32.xlu1 %v1389_v9, %s1242_s14 }
  0x8c   : > { %v1445_v10 = vpop.permute.xlu1 %501  ;;  %v498_v11 = vpop.permute.xlu0 %497 }
  0x90   : > { %v496_v12 = vpop.permute.xlu1 %495  ;;  %v500_v13 = vpop.permute.xlu0 %499 }
  0x91   : > { %v1450_v15 = vsel %vm328_vm0, %v498_v11, %v500_v13  ;;  %v1454_v16 = vsel %vm328_vm0, %v500_v13, %v1445_v10  ;;  %v1462_v19 = vsel %vm328_vm0, %v496_v12, %v498_v11 }
  0x92   : > { %615 = vrot.lane.b32.xlu0 %v1450_v15, %s1237_s9  ;;  %617 = vrot.lane.b32.xlu1 %v1454_v16, %s1237_s9 }
  0x94   : > { %v435_v17 = vpop.permute.xlu1 %434  ;;  %v437_v18 = vpop.permute.xlu0 %436 }
  0x95   : > { %v444_v20 = vsel %vm442_vm1, %v435_v17, %v437_v18 }
  0x96   : > { %613 = vrot.lane.b32.xlu0 %v1462_v19, %s1237_s9  ;;  %326 = vrot.lane.b32.xlu1 %v1389_v9, %s1236_s7 }
  0x97   : > { %674 = vmatprep.subr.bf16.mxu0 %v444_v20 }
  0x98   : > { %v433_v21 = vpop.permute.xlu1 %432  ;;  %v1469_v22 = vpop.permute.xlu0 %605 }
  0x99   : > { %v443_v23 = vsel %vm442_vm1, %v433_v21, %v435_v17 }
  0x9a   : > { %675 = vmatpush1.bf16.msra.mxu0 %v443_v23  ;;  %324 = vrot.lane.b32.xlu0 %v1385_v8, %s1236_s7 }
  0x9b   : > { %589 = vrot.lane.b32.xlu1 %v1353_v3, %s1238_s10 }
  0x9c   : > { %v1476_v24 = vpop.permute.xlu1 %607  ;;  %v604_v25 = vpop.permute.xlu0 %603 }
  0x9d   : > { %v1480_v26 = vsel %vm442_vm1, %v604_v25, %v1469_v22 }
  0x9e   : > { %587 = vrot.lane.b32.xlu0 %v1345_v1, %s1238_s10 }
  0x9f   : > { %569 = vrot.lane.b32.xlu1 %v1345_v1, %s1239_s11 }
  0xa0   : > { %v416_v27 = vpop.permute.xlu1 %415  ;;  %v418_v28 = vpop.permute.xlu0 %417 }
  0xa1   : > { %v425_v29 = vsel %vm423_vm2, %v416_v27, %v418_v28 }
  0xa2   : > { %585 = vrot.lane.b32.xlu0 %v1349_v2, %s1238_s10  ;;  %676 = vmatprep.subr.bf16.mxu0 %v425_v29 }
  0xa3   : > { %567 = vrot.lane.b32.xlu1 %v1349_v2, %s1239_s11 }
  0xa4   : > { %v414_v30 = vpop.permute.xlu1 %413  ;;  %v1491_v31 = vpop.permute.xlu0 %503 }
  0xa5   : > { %v424_v32 = vsel %vm423_vm2, %v414_v30, %v416_v27  ;;  %v1591_v30 = vsel %vm328_vm0, %v1445_v10, %v1491_v31  ;;  %v644_v10 = vld [vmem:[%s1745_s3 + $0x8] sm:$0xff] }
  0xa6   : > { %677 = vmatpush1.bf16.msra.mxu0 %v424_v32  ;;  %571 = vrot.lane.b32.xlu0 %v1353_v3, %s1239_s11 }
  0xa7   : > { %593 = vrot.lane.b32.xlu1 %v1381_v7, %s1238_s10 }
  0xa8   : > { %v439_v33 = vpop.permute.xlu1 %438  ;;  %v441_v35 = vpop.permute.xlu0 %440 }
  0xa9   : > { %v1499_v34 = vsel %vm442_vm1, %v437_v18, %v439_v33  ;;  %v1502_v36 = vsel %vm442_vm1, %v439_v33, %v441_v35 }
  0xaa   : > { %591 = vrot.lane.b32.xlu0 %v1343_v0, %s1238_s10 }
  0xab   : > { %553 = vrot.lane.b32.xlu1 %v1353_v3, %s1240_s12 }
  0xac   : > { %v397_v37 = vpop.permute.xlu1 %396  ;;  %v399_v38 = vpop.permute.xlu0 %398 }
  0xad   : > { %v406_v39 = vsel %vm404_vm3, %v397_v37, %v399_v38 }
  0xae   : > { %551 = vrot.lane.b32.xlu0 %v1345_v1, %s1240_s12  ;;  %678 = vmatprep.subr.bf16.mxu0 %v406_v39 }
  0xaf   : > { %573 = vrot.lane.b32.xlu1 %v1343_v0, %s1239_s11 }
  0xb0   : > { %v395_v40 = vpop.permute.xlu1 %394  ;;  %v420_v41 = vpop.permute.xlu0 %419 }
  0xb1   : > { %v405_v42 = vsel %vm404_vm3, %v395_v40, %v397_v37  ;;  %v1515_v43 = vsel %vm423_vm2, %v418_v28, %v420_v41 }
  0xb2   : > { %679 = vmatpush1.bf16.msra.mxu0 %v405_v42  ;;  %549 = vrot.lane.b32.xlu0 %v1349_v2, %s1240_s12 }
  0xb3   : > { %533 = vrot.lane.b32.xlu1 %v1345_v1, %s1241_s13 }
  0xb4   : > { %v422_v44 = vpop.permute.xlu1 %421  ;;  %v378_v45 = vpop.permute.xlu0 %377 }
  0xb5   : > { %v1522_v46 = vsel %vm423_vm2, %v420_v41, %v422_v44  ;;  %v624_v41 = vsel %vm442_vm1, %v1469_v22, %v1476_v24 }
  0xb6   : > { %575 = vrot.lane.b32.xlu0 %v1381_v7, %s1239_s11 }
  0xb7   : > { %531 = vrot.lane.b32.xlu1 %v1349_v2, %s1241_s13 }
  0xb8   : > { %v380_v47 = vpop.permute.xlu1 %379  ;;  %v376_v48 = vpop.permute.xlu0 %375 }
  0xb9   : > { %v387_v49 = vsel %vm385_vm4, %v378_v45, %v380_v47  ;;  %v386_v50 = vsel %vm385_vm4, %v376_v48, %v378_v45  ;;  %v1625_v45 = vld [vmem:[%s1744_s2 + $0x8] ss:$12 sps:$4 sm:$0xff]  }
  0xba   : > { %680 = vmatprep.subr.bf16.mxu0 %v387_v49  ;;  %535 = vrot.lane.b32.xlu0 %v1353_v3, %s1241_s13 }
  0xbb   : > { %557 = vrot.lane.b32.xlu1 %v1381_v7, %s1240_s12  ;;  %681 = vmatpush1.bf16.msra.mxu0 %v386_v50 }
  0xbc   : > { %v401_v51 = vpop.permute.xlu1 %400  ;;  %v403_v53 = vpop.permute.xlu0 %402 }
  0xbd   : > { %v1535_v52 = vsel %vm404_vm3, %v399_v38, %v401_v51  ;;  %v1538_v54 = vsel %vm404_vm3, %v401_v51, %v403_v53 }
  0xbe   : > { %555 = vrot.lane.b32.xlu0 %v1343_v0, %s1240_s12  ;;  %s1696_s12 = sshll.u32 %s1218_s20, 2  ;;  %s254_s20 = sand.u32 1, %s1210_s18  }
  0xbf   : > { %517 = vrot.lane.b32.xlu1 %v1353_v3, %s1242_s14  ;;  %p268_p10 = scmp.lt.s32.totalorder %s1696_s12, 11  ;;  %s937_s28 = sadd.s32 (%p1321_p5), %s1094_s27, %s1696_s12 }
  0xc0   : > { %v359_v55 = vpop.permute.xlu1 %358  ;;  %v361_v56 = vpop.permute.xlu0 %360  ;;  %s1086_s30 = sshll.u32 (%p1321_p5), %s937_s28, 2 }
  0xc1   : > { %v368_v57 = vsel %vm366_vm5, %v359_v55, %v361_v56 }
  0xc2   : > { %515 = vrot.lane.b32.xlu0 %v1345_v1, %s1242_s14  ;;  %682 = vmatprep.subr.bf16.mxu0 %v368_v57 }
  0xc3   : > { %537 = vrot.lane.b32.xlu1 %v1343_v0, %s1241_s13 }
  0xc4   : > { %v357_v58 = vpop.permute.xlu1 %356  ;;  %v382_v59 = vpop.permute.xlu0 %381 }
  0xc5   : > { %v367_v60 = vsel %vm366_vm5, %v357_v58, %v359_v55  ;;  %v1551_v61 = vsel %vm385_vm4, %v380_v47, %v382_v59 }
  0xc6   : > { %683 = vmatpush1.bf16.msra.mxu0 %v367_v60  ;;  %513 = vrot.lane.b32.xlu0 %v1349_v2, %s1242_s14 }
  0xc7   : > { %519 = vrot.lane.b32.xlu1 %v1343_v0, %s1242_s14 }
  0xc8   : > { %v384_v62 = vpop.permute.xlu1 %383  ;;  %v340_v11 = vpop.permute.xlu0 %339 }
  0xc9   : > { %v1563_v12 = vsel %vm385_vm4, %v382_v59, %v384_v62 }
  0xca   : > { %539 = vrot.lane.b32.xlu0 %v1381_v7, %s1241_s13  ;;  %s269_s13 = scalar_select %p268_p10, %s1696_s12, 11 }
  0xcb   : > { %453 = vrot.lane.b32.xlu1 %v1357_v4, %s1244_s17 }
  0xcc   : > { %v1569_v13 = vpop.permute.xlu1 %341  ;;  %v338_v17 = vpop.permute.xlu0 %337  ;;  %s270_s16 = scalar_lea.vmem %s1746_s4, %s269_s13 }
  0xcd   : > { %v349_v18 = vsel %vm347_vm6, %v340_v11, %v1569_v13  ;;  %v348_v20 = vsel %vm347_vm6, %v338_v17, %v340_v11 }
  0xce   : > { %684 = vmatprep.subr.bf16.mxu0 %v349_v18  ;;  %521 = vrot.lane.b32.xlu0 %v1381_v7, %s1242_s14 }
  0xcf   : > { %451 = vrot.lane.b32.xlu1 %v1365_v6, %s1244_s17  ;;  %685 = vmatpush1.bf16.msra.mxu0 %v348_v20 }
  0xd0   : > { %v363_v21 = vpop.permute.xlu1 %362  ;;  %v365_v25 = vpop.permute.xlu0 %364 }
  0xd1   : > { %v1578_v23 = vsel %vm366_vm5, %v361_v56, %v363_v21  ;;  %v1581_v27 = vsel %vm366_vm5, %v363_v21, %v365_v25 }
  0xd2   : > { %455 = vrot.lane.b32.xlu0 %v1361_v5, %s1244_s17 }
  0xd3   : > { %621 = vrot.lane.b32.xlu1 %v1491_v31, %s1237_s9 }
  0xd4   : > { %v321_v28 = vpop.permute.xlu1 %320  ;;  %v1586_v29 = vpop.permute.xlu0 %322 }
  0xd5   : > { %v330_v32 = vsel %vm328_vm0, %v321_v28, %v1586_v29 }
  0xd6   : > { %619 = vrot.lane.b32.xlu0 %v1591_v30, %s1237_s9  ;;  %686 = vmatprep.subr.bf16.mxu0 %v330_v32 }
  0xd7   : > { %459 = vrot.lane.b32.xlu1 %v1389_v9, %s1244_s17  ;;  %v643_v9 = vld [vmem:[%s1745_s3] sm:$0xff] }
  0xd8   : > { %v319_v33 = vpop.permute.xlu1 %318  ;;  %v344_v37 = vpop.permute.xlu0 %343 }
  0xd9   : > { %v329_v35 = vsel %vm328_vm0, %v319_v33, %v321_v28  ;;  %v350_v59 = vsel %vm347_vm6, %v1569_v13, %v344_v37 }
  0xda   : > { %687 = vmatpush1.bf16.msra.mxu0 %v329_v35  ;;  %457 = vrot.lane.b32.xlu0 %v1385_v8, %s1244_s17  ;;  %s1058_s17 = sshll.u32 %s254_s20, 5 }
  0xdb   : > { %611 = vrot.lane.b32.xlu1 %v1381_v7, %s1237_s9  ;;  %688 = vmatprep.subr.bf16.mxu0 %v1357_v4  ;;  %s1704_s18 = scalar_lea.vmem [#allocation2], %s1058_s17 }
  0xdc   : > { %v346_v31 = vpop.permute.xlu1 %345 }
  0xde   : > { %689 = vmatpush1.bf16.msra.mxu0 %v1365_v6  ;;  %609 = vrot.lane.b32.xlu0 %v1343_v0, %s1237_s9  ;;  %s939_s9 = scalar_lea.vmem (%p1321_p5), %s1747_s5, %s1086_s30 }
  0xdf   : > { %652 = vperm.xlu1 %1161, %v644_v10  }
  0xe2   : > { %647 = vperm.xlu0 %1160, %v643_v9  }
 0x104   : > { %v616_v7 = vpop.permute.xlu0 %615  ;;  %v1612_v38 = vpop.permute.xlu1 %617 }
 0x105   : > { %v628_v4 = vsel %vm442_vm1, %v616_v7, %v1612_v38 }
 0x106   : > { %729 = vmatprep.subr.bf16.mxu1 %v628_v4 }
 0x108   : > { %v614_v39 = vpop.permute.xlu0 %613  ;;  %v327_v6 = vpop.permute.xlu1 %326 }
 0x109   : > { %v627_v40 = vsel %vm442_vm1, %v614_v39, %v616_v7 }
 0x10a   : > { %730 = vmatpush1.bf16.msra.mxu1 %v627_v40 }
 0x10b   : > { %731 = vmatprep.subr.bf16.mxu1 %v624_v41 }
 0x10c   : > { %v325_v42 = vpop.permute.xlu0 %324 }
 0x10d   : > { %v1620_v44 = vpop.permute.xlu1 %589  ;;  %v331_v11 = vsel %vm328_vm0, %v1586_v29, %v325_v42 }
 0x10e   : > { %732 = vmatpush1.bf16.msra.mxu1 %v1480_v26 }
 0x10f   : > { %760 = vmatprep.subr.bf16.mxu1 %v1502_v36 }
 0x110   : > { %v588_v47 = vpop.permute.xlu0 %587 }
 0x111   : > { %v570_v48 = vpop.permute.xlu1 %569  ;;  %1078 = vmatmul.mubr.msk.bf16.vlgmr.msra.gmra.mxu1 %vm670_vm7, %v1625_v45  ;;  %v596_v22 = vsel %vm423_vm2, %v588_v47, %v1620_v44 }
 0x112   : > { %690 = vmatprep.subr.bf16.mxu0 %v596_v22  ;;  %761 = vmatpush1.bf16.msra.mxu1 %v1499_v34 }
 0x113   : > { %762 = vmatprep.subr.bf16.mxu1 %v1522_v46  ;;  %792 = vmatprep.mubr.bf16.mxu1 %v1560_v63 }
 0x114   : > { %v586_v49 = vpop.permute.xlu0 %585 }
 0x115   : > { %v568_v26 = vpop.permute.xlu1 %567  ;;  %v595_v50 = vsel %vm423_vm2, %v586_v49, %v588_v47 }
 0x116   : > { %691 = vmatpush2.bf16.msra.mxu0 %v595_v50  ;;  %763 = vmatpush1.bf16.msra.mxu1 %v1515_v43  ;;  %v577_v34 = vsel %vm404_vm3, %v568_v26, %v570_v48 }
 0x117   : > { %764 = vmatprep.subr.bf16.mxu1 %v1538_v54 }
 0x118   : > { %v572_v36 = vpop.permute.xlu0 %571 }
 0x119   : > { %v594_v51 = vpop.permute.xlu1 %593  ;;  %v578_v53 = vsel %vm404_vm3, %v570_v48, %v572_v36 }
 0x11a   : > { %692 = vmatprep.subr.bf16.mxu0 %v578_v53  ;;  %765 = vmatpush1.bf16.msra.mxu1 %v1535_v52  ;;  %v351_v52 = vsel %vm347_vm6, %v344_v37, %v346_v31 }
 0x11b   : > { %693 = vmatpush2.bf16.msra.mxu0 %v577_v34  ;;  %766 = vmatprep.subr.bf16.mxu1 %v1563_v12 }
 0x11c   : > { %v592_v46 = vpop.permute.xlu0 %591 }
 0x11d   : > { %v554_v55 = vpop.permute.xlu1 %553  ;;  %v598_v20 = vsel %vm423_vm2, %v592_v46, %v594_v51  ;;  %v597_v25 = vsel %vm423_vm2, %v1620_v44, %v592_v46  ;;  %v1177_v44 = vld [vmem:[%s1744_s2] ss:$12 sps:$4 sm:$0xff]  }
 0x11e   : > { %767 = vmatpush1.bf16.msra.mxu1 %v1551_v61  ;;  %v332_v61 = vsel %vm328_vm0, %v325_v42, %v327_v6 }
 0x11f   : > { %768 = vmatprep.subr.bf16.mxu1 %v1581_v27 }
 0x120   : > { %v552_v43 = vpop.permute.xlu0 %551 }
 0x121   : > { %v574_v54 = vpop.permute.xlu1 %573  ;;  %v560_v56 = vsel %vm385_vm4, %v552_v43, %v554_v55 }
 0x122   : > { %694 = vmatprep.subr.bf16.mxu0 %v560_v56  ;;  %769 = vmatpush1.bf16.msra.mxu1 %v1578_v23  ;;  %v579_v29 = vsel %vm404_vm3, %v572_v36, %v574_v54 }
 0x123   : > { %770 = vmatprep.subr.bf16.mxu1 %v351_v52  ;;  %v870_v52 = vld [vmem:[%s270_s16] sm:$0xf] }
 0x124   : > { %v550_v57 = vpop.permute.xlu0 %549 }
 0x125   : > { %v534_v58 = vpop.permute.xlu1 %533  ;;  %v559_v60 = vsel %vm385_vm4, %v550_v57, %v552_v43 }
 0x126   : > { %695 = vmatpush2.bf16.msra.mxu0 %v559_v60  ;;  %771 = vmatpush1.bf16.msra.mxu1 %v350_v59 }
 0x127   : > { %772 = vmatprep.subr.bf16.mxu1 %v332_v61 }
 0x128   : > { %v576_v62 = vpop.permute.xlu0 %575 }
 0x129   : > { %v532_v63 = vpop.permute.xlu1 %531 }
 0x12a   : > { %773 = vmatpush1.bf16.msra.mxu1 %v331_v11  ;;  %v541_v13 = vsel %vm366_vm5, %v532_v63, %v534_v58 }
 0x12b   : > { %774 = vmatprep.subr.bf16.mxu1 %v1385_v8  ;;  %v580_v8 = vsel %vm404_vm3, %v574_v54, %v576_v62 }
 0x12c   : > { %v536_v12 = vpop.permute.xlu0 %535 }
 0x12d   : > { %v558_v17 = vpop.permute.xlu1 %557  ;;  %v542_v18 = vsel %vm366_vm5, %v534_v58, %v536_v12 }
 0x12e   : > { %696 = vmatprep.subr.bf16.mxu0 %v542_v18  ;;  %775 = vmatpush1.bf16.msra.mxu1 %v1361_v5 }
 0x12f   : > { %697 = vmatpush2.bf16.msra.mxu0 %v541_v13  ;;  %776 = vmatprep.subr.bf16.mxu1 %v598_v20 }
 0x130   : > { %v556_v21 = vpop.permute.xlu0 %555 }
 0x131   : > { %v518_v23 = vpop.permute.xlu1 %517  ;;  %v562_v32 = vsel %vm385_vm4, %v556_v21, %v558_v17  ;;  %v561_v10 = vsel %vm385_vm4, %v554_v55, %v556_v21 }
 0x132   : > { %777 = vmatpush2.bf16.msra.mxu1 %v597_v25 }
 0x133   : > { %778 = vmatprep.subr.bf16.mxu1 %v580_v8 }
 0x134   : > { %v516_v27 = vpop.permute.xlu0 %515 }
 0x135   : > { %v538_v28 = vpop.permute.xlu1 %537  ;;  %v524_v5 = vsel %vm347_vm6, %v516_v27, %v518_v23 }
 0x136   : > { %698 = vmatprep.subr.bf16.mxu0 %v524_v5  ;;  %779 = vmatpush2.bf16.msra.mxu1 %v579_v29  ;;  %v543_v4 = vsel %vm366_vm5, %v536_v12, %v538_v28 }
 0x137   : > { %780 = vmatprep.subr.bf16.mxu1 %v562_v32 }
 0x138   : > { %v514_v33 = vpop.permute.xlu0 %513 }
 0x139   : > { %v520_v35 = vpop.permute.xlu1 %519  ;;  %v523_v9 = vsel %vm347_vm6, %v514_v33, %v516_v27 }
 0x13a   : > { %699 = vmatpush2.bf16.msra.mxu0 %v523_v9  ;;  %781 = vmatpush2.bf16.msra.mxu1 %v561_v10  ;;  %v525_v41 = vsel %vm347_vm6, %v518_v23, %v520_v35 }
 0x13b   : > { %700 = vmatprep.subr.bf16.mxu0 %v1450_v15 }
 0x13c   : > { %v540_v31 = vpop.permute.xlu0 %539 }
 0x13d   : > { %v454_v37 = vpop.permute.xlu1 %453  ;;  %v544_v7 = vsel %vm366_vm5, %v538_v28, %v540_v31 }
 0x13e   : > { %701 = vmatpush2.bf16.msra.mxu0 %v1462_v19  ;;  %782 = vmatprep.subr.bf16.mxu1 %v544_v7 }
 0x13f   : > { %783 = vmatpush2.bf16.msra.mxu1 %v543_v4  ;;  %702 = vmatprep.subr.bf16.mxu0 %v1345_v1 }
 0x140   : > { %v522_v39 = vpop.permute.xlu0 %521 }
 0x141   : > { %v452_v6 = vpop.permute.xlu1 %451  ;;  %v526_v40 = vsel %vm347_vm6, %v520_v35, %v522_v39 }
 0x142   : > { %784 = vmatprep.subr.bf16.mxu1 %v526_v40  ;;  %703 = vmatpush2.bf16.msra.mxu0 %v1349_v2  ;;  %v462_v1 = vsel %vm461_vm8, %v452_v6, %v454_v37 }
 0x143   : > { %785 = vmatpush2.bf16.msra.mxu1 %v525_v41 }
 0x144   : > { %v456_v15 = vpop.permute.xlu0 %455  ;;  %786 = vmatprep.subr.bf16.mxu1 %v1591_v30 }
 0x145   : > { %v622_v42 = vpop.permute.xlu1 %621  ;;  %v463_v19 = vsel %vm461_vm8, %v454_v37, %v456_v15 }
 0x146   : > { %704 = vmatprep.subr.bf16.mxu0 %v463_v19 }
 0x147   : > { %705 = vmatpush2.bf16.msra.mxu0 %v462_v1  ;;  %787 = vmatpush2.bf16.msra.mxu1 %v1454_v16 }
 0x148   : > { %v620_v47 = vpop.permute.xlu0 %619  ;;  %788 = vmatprep.subr.bf16.mxu1 %v1343_v0 }
 0x149   : > { %v460_v2 = vpop.permute.xlu1 %459  ;;  %v629_v30 = vsel %vm442_vm1, %v1612_v38, %v620_v47  ;;  %v630_v48 = vsel %vm442_vm1, %v620_v47, %v622_v42 }
 0x14a   : > { %707 = vmatmul.mubr.bf16.vlgmr.msra.gmra.mxu0 %v1177_v44  ;;  %815 = vmatprep.subr.bf16.mxu0 %v630_v48 }
 0x14b   : > { %789 = vmatpush2.bf16.msra.mxu1 %v1353_v3  ;;  %816 = vmatpush1.bf16.msra.mxu0 %v629_v30 }
 0x14c   : > { %v458_v22 = vpop.permute.xlu0 %457  ;;  %835 = vmatprep.mubr.bf16.mxu0 %v1243_v14  ;;  %v872_v14 = vlaneseq }
 0x14d   : > { %v464_v16 = vsel %vm461_vm8, %v456_v15, %v458_v22  ;;  %v465_v49 = vsel %vm461_vm8, %v458_v22, %v460_v2  ;;  %v612_v0 = vpop.permute.xlu1 %611 }
 0x14e   : > { %790 = vmatprep.subr.bf16.mxu1 %v465_v49 }
 0x14f   : > { %791 = vmatpush2.bf16.msra.mxu1 %v464_v16 }
 0x150   : > { %v610_v26 = vpop.permute.xlu0 %609 }
 0x151   : > { %v625_v38 = vsel %vm442_vm1, %v1476_v24, %v610_v26  ;;  %v626_v50 = vsel %vm442_vm1, %v610_v26, %v612_v0  ;;  %v873_v24 = vshrl.u32 %v872_v14, 7 }
 0x152   : > { %793 = vmatmul.mubr.bf16.vlgmr.msra.gmra.mxu1 %v1177_v44  ;;  %817 = vmatprep.subr.bf16.mxu0 %v626_v50 }
 0x153   : > { %818 = vmatpush1.bf16.msra.mxu0 %v625_v38  ;;  %v874_v55 = vsub.s32 0, %v873_v24  ;;  %v878_v54 = vsub.s32 1, %v873_v24  ;;  %v882_v33 = vsub.s32 2, %v873_v24  ;;  %v886_v37 = vsub.s32 3, %v873_v24 }
 0x155   : > { %v875_v63 = vrot.slane %v870_v52, %v874_v55  ;;  %v879_v11 = vrot.slane %v870_v52, %v878_v54  ;;  %v883_v1 = vrot.slane %v870_v52, %v882_v33  ;;  %v887_v47 = vrot.slane %v870_v52, %v886_v37 }
 0x156   : > { %1079 = vmatmul.mubr.msk.bf16.vlgmr.msra.gmra.mxu0 %vm670_vm7, %v1625_v45 }
 0x15a   : > { %v653_v46 = vpop.permute.xlu1 %652 }
 0x15d   : > { %v648_v51 = vpop.permute.xlu0 %647 }
 0x1d1   : > { %v751_v3 = vpop.f32.mrf.mxu1 }
 0x1d3   : > { %v753_v36 = vpop.f32.mrf.mxu1 }
 0x1d5   : > { %v755_v45 = vpop.f32.mrf.mxu1 }
 0x1d7   : > { %v757_v62 = vpop.f32.mrf.mxu1 }
 0x20a   : > { %v708_v53 = vpop.f32.mrf.mxu0 }
 0x20b   : > { %v709_v34 = vadd.f32 %v708_v53, %v648_v51 }
 0x20c   : > { %v710_v43 = vpop.f32.mrf.mxu0 }
 0x20d   : > { %v752_v56 = vadd.f32 %v751_v3, %v709_v34  ;;  %v711_v57 = vadd.f32 %v710_v43, %v648_v51 }
 0x20e   : > { %v712_v58 = vpop.f32.mrf.mxu0 }
 0x20f   : > { %vm846_vm9 = vcmp.ge.f32.partialorder %v752_v56, 0.0  ;;  %v854_v59 = vmul.f32 0.1, %v752_v56  ;;  %v754_v60 = vadd.f32 %v753_v36, %v711_v57  ;;  %v713_v61 = vadd.f32 %v712_v58, %v653_v46 }
 0x210   : > { %v714_v12 = vpop.f32.mrf.mxu0 }
 0x211   : > { %v862_v17 = vsel %vm846_vm9, %v752_v56, %v854_v59  ;;  %vm847_vm10 = vcmp.ge.f32.partialorder %v754_v60, 0.0  ;;  %v855_v18 = vmul.f32 0.1, %v754_v60  ;;  %v756_v13 = vadd.f32 %v755_v45, %v713_v61 }
 0x212   : > { %v715_v20 = vadd.f32 %v714_v12, %v653_v46  ;;  %v794_v21 = vpop.f32.mrf.mxu1  ;;  %v892_v27 = vmul.f32 %v875_v63, %v862_v17 }
 0x213   : > { %v863_v23 = vsel %vm847_vm10, %v754_v60, %v855_v18  ;;  %vm850_vm11 = vcmp.ge.f32.partialorder %v756_v13, 0.0  ;;  %v858_v25 = vmul.f32 0.1, %v756_v13  ;;  %v795_v8 = vadd.f32 %v794_v21, %v648_v51 }
 0x214   : > { %v893_v28 = vmul.f32 %v879_v11, %v863_v23  ;;  %v758_v29 = vadd.f32 %v757_v62, %v715_v20  ;;  %v796_v5 = vpop.f32.mrf.mxu1 }
 0x215   : > { %v866_v32 = vsel %vm850_vm11, %v756_v13, %v858_v25  ;;  %v797_v6 = vadd.f32 %v796_v5, %v648_v51 }
 0x216   : > { %v1089_v35 = vpack.c.bf16 %v893_v28, %v892_v27  ;;  %vm851_vm12 = vcmp.ge.f32.partialorder %v758_v29, 0.0  ;;  %v859_v10 = vmul.f32 0.1, %v758_v29  ;;  %v798_v9 = vpop.f32.mrf.mxu1  ;;  %v837_v31 = vpop.f32.mrf.mxu0  ;;  %v896_v4 = vmul.f32 %v875_v63, %v866_v32 }
 0x217   : > { %v838_v7 = vadd.f32 %v837_v31, %v795_v8  ;;  %v799_v42 = vadd.f32 %v798_v9, %v653_v46 }
 0x218   : > { %924 = vst [vmem:[%s1704_s18] sm:$0xff] %v1089_v35  ;;  %v867_v39 = vsel %vm851_vm12, %v758_v29, %v859_v10  ;;  %v800_v40 = vpop.f32.mrf.mxu1  ;;  %v839_v41 = vpop.f32.mrf.mxu0 }
 0x219   : > { %v897_v15 = vmul.f32 %v879_v11, %v867_v39  ;;  %vm848_vm13 = vcmp.ge.f32.partialorder %v838_v7, 0.0  ;;  %v856_v19 = vmul.f32 0.1, %v838_v7  ;;  %v840_v44 = vadd.f32 %v839_v41, %v797_v6 }
 0x21a   : > { %v841_v2 = vpop.f32.mrf.mxu0  ;;  %v801_v22 = vadd.f32 %v800_v40, %v653_v46 }
 0x21b   : > { %v1091_v30 = vpack.c.bf16 %v897_v15, %v896_v4  ;;  %v864_v48 = vsel %vm848_vm13, %v838_v7, %v856_v19  ;;  %v842_v16 = vadd.f32 %v841_v2, %v799_v42  ;;  %vm849_vm14 = vcmp.ge.f32.partialorder %v840_v44, 0.0 }
 0x21c   : > { %v857_v49 = vmul.f32 0.1, %v840_v44  ;;  %v843_v0 = vpop.f32.mrf.mxu0  ;;  %v894_v50 = vmul.f32 %v883_v1, %v864_v48 }
 0x21d   : > { %926 = vst [vmem:[%s1704_s18 + $0x10] sm:$0xff] %v1091_v30  ;;  %vm852_vm15 = vcmp.ge.f32.partialorder %v842_v16, 0.0  ;;  %v860_v26 = vmul.f32 0.1, %v842_v16  ;;  %v844_v38 = vadd.f32 %v843_v0, %v801_v22 }
 0x21e   : > { %v865_v3 = vsel %vm849_vm14, %v840_v44, %v857_v49 }
 0x21f   : > { %v895_v14 = vmul.f32 %v887_v47, %v865_v3  ;;  %v868_v36 = vsel %vm852_vm15, %v842_v16, %v860_v26  ;;  %vm853_vm0 = vcmp.ge.f32.partialorder %v844_v38, 0.0  ;;  %v861_v51 = vmul.f32 0.1, %v844_v38  ;;  %v952_v55 = vld [vmem:[%s1704_s18] sm:$0xff] (%p1321_p5) }
 0x220   : > { %v898_v34 = vmul.f32 %v883_v1, %v868_v36  ;;  %953 = vst [vmem:[%s939_s9] sm:$0xff] (%p1321_p5), %v952_v55 }
 0x221   : > { %v1090_v24 = vpack.c.bf16 %v895_v14, %v894_v50  ;;  %v869_v53 = vsel %vm853_vm0, %v844_v38, %v861_v51 }
 0x222   : > { %v899_v46 = vmul.f32 %v887_v47, %v869_v53  ;;  %934 = sbr.rel (!%p1321_p5) target bundleno = 559 (0x22f), region = 44 }
 0x223   : > { %925 = vst [vmem:[%s1704_s18 + $0x8] sm:$0xff] %v1090_v24 }
 0x224   : > { %v1092_v45 = vpack.c.bf16 %v899_v46, %v898_v34  ;;  %v956_v54 = vld [vmem:[%s1704_s18 + $0x10] sm:$0xff] (%p1321_p5) }
 0x225   : > { %957 = vst [vmem:[%s939_s9 + $0x30] sm:$0xff] (%p1321_p5), %v956_v54 }
 0x226   : > { %927 = vst [vmem:[%s1704_s18 + $0x18] sm:$0xff] %v1092_v45 }
 0x22a   : > { %v954_v43 = vld [vmem:[%s1704_s18 + $0x8] sm:$0xff] }
 0x22b   : > { %955 = vst [vmem:[%s939_s9 + $0x8] sm:$0xff] %v954_v43 }
 0x22d   : > { %v958_v56 = vld [vmem:[%s1704_s18 + $0x18] sm:$0xff] }
 0x22e   : > { %959 = vst [vmem:[%s939_s9 + $0x38] sm:$0xff] %v958_v56 }
 0x22f PF: > { %s15_s24 = sadd.s32 1, %s1234_s24   ;;  %s1749_s18 = smov %s1214_s19 }
 0x230   : > { %p12_p11 = scmp.ge.s32.totalorder %s15_s24, 8   ;;  %s1750_s19 = smov %s1332_s8 }
 0x231   : > { %s1751_s20 = smov %s1226_s22  ;;  %s1752_s21 = smov %s1230_s23 }
 0x232   : > { %s1753_s22 = smov %s1756_s25  ;;  %s1754_s23 = smov %s1760_s26 }
 0x233   :  { %14 = sbr.rel (!%p12_p11) target bundleno = 4 (0x4), region = 101 }

</bundles_post_ra>
